<compile_context>
chip_gen: v7x
topology: tpu7x:2x2x1
jax: 0.10.0
libtpu: 0.0.40
codegen_flags: <defaults>
</compile_context>

<pallas_src>
import jax
import jax.numpy as jnp
from jax import lax
from jax.experimental import pallas as pl
from jax.experimental.pallas import tpu as pltpu


VMEM_SPEC = pl.BlockSpec(memory_space=pltpu.MemorySpace.VMEM)


# ----------------------------------------------------------------------------
# Pallas kernels
# ----------------------------------------------------------------------------
def conv_relu_pool_kernel(xt_ref, w_ref, b_ref, o_ref):
    """Fused conv (matmul on pre-gathered patches) + bias + ReLU + 2x2 max-pool.

    xt_ref: (4, K, M)   window-major, transposed im2col patches; axis 0 indexes
                        the 2x2 pooling-window slot, lane axis = M pooled positions
    w_ref : (Cout, K)   conv weight flattened with K ordered (kh, kw, cin)
    b_ref : (Cout, 1)   bias (broadcast over lanes)
    o_ref : (Cout, M)   pooled activation, lane-dense output
    """
    w = w_ref[...]
    bias = b_ref[...]

    def window(k):
        y = jnp.dot(w, xt_ref[k], preferred_element_type=jnp.float32) + bias
        return jnp.maximum(y, 0.0)          # ReLU commutes with the max below

    acc = window(0)
    for k in range(1, 4):                   # static unroll over the 2x2 window
        acc = jnp.maximum(acc, window(k))
    o_ref[...] = acc.astype(o_ref.dtype)


def fc_stack_kernel(x_ref, w1_ref, b1_ref, w2_ref, b2_ref, w3_ref, b3_ref, o_ref):
    """fc1 + ReLU -> fc2 + ReLU -> fc3, all intermediates VMEM-resident."""
    h = jnp.dot(x_ref[...], w1_ref[...], preferred_element_type=jnp.float32) + b1_ref[...]
    h = jnp.maximum(h, 0.0)
    h = jnp.dot(h, w2_ref[...], preferred_element_type=jnp.float32) + b2_ref[...]
    h = jnp.maximum(h, 0.0)
    y = jnp.dot(h, w3_ref[...], preferred_element_type=jnp.float32) + b3_ref[...]
    o_ref[...] = y.astype(o_ref.dtype)


# ----------------------------------------------------------------------------
# pallas_call wrappers (single invocation, everything in VMEM)
# ----------------------------------------------------------------------------
def conv_relu_pool_pallas(patches_t, w_t, b):
    """patches_t: (4, K, M) f32, w_t: (Cout, K) f32, b: (Cout,) -> (Cout, M) f32."""
    _, _, m = patches_t.shape
    cout = w_t.shape[0]
    return pl.pallas_call(
        conv_relu_pool_kernel,
        out_shape=jax.ShapeDtypeStruct((cout, m), jnp.float32),
        in_specs=[VMEM_SPEC, VMEM_SPEC, VMEM_SPEC],
        out_specs=VMEM_SPEC,
    )(patches_t, w_t, b.reshape(cout, 1))


def fc_stack_pallas(x, w1, b1, w2, b2, w3, b3):
    """x: (B, 400); torch Linear weights already transposed to (in, out)."""
    m = x.shape[0]
    n = w3.shape[1]
    return pl.pallas_call(
        fc_stack_kernel,
        out_shape=jax.ShapeDtypeStruct((m, n), jnp.float32),
        in_specs=[VMEM_SPEC] * 7,
        out_specs=VMEM_SPEC,
    )(x, w1, b1.reshape(1, -1), w2, b2.reshape(1, -1), w3, b3.reshape(1, -1))


# ----------------------------------------------------------------------------
# XLA-side layout glue (pure data rearrangement, tiny tensors)
# ----------------------------------------------------------------------------
# TODO(synk): full single-kernel fusion of both conv stages would need in-kernel
# patch gathering (reshape/gather-heavy in Mosaic); patches are built in XLA.
def im2col_pool_windows_T(x, kh, kw):
    """x: (B, H, W, C) NHWC -> (4, KH*KW*C, B*PH*PW) window-major transposed patches.

    out[k, (i*KW+j)*C + c, (b*PH + ph)*PW + pw] = x[b, 2*ph + k//2 + i, 2*pw + k%2 + j, c]
    """
    b, h, w, c = x.shape
    oh, ow = h - kh + 1, w - kw + 1
    ph, pw = oh // 2, ow // 2
    cols = [x[:, i:i + oh, j:j + ow, :] for i in range(kh) for j in range(kw)]
    p = jnp.stack(cols, axis=3)                       # (B, OH, OW, KH*KW, C)
    p = p.reshape(b, oh, ow, kh * kw * c)             # K ordered (i, j, c)
    p = p.reshape(b, ph, 2, pw, 2, kh * kw * c)
    p = jnp.transpose(p, (2, 4, 5, 0, 1, 3))          # (2, 2, K, B, PH, PW)
    return p.reshape(4, kh * kw * c, b * ph * pw), ph, pw


def conv_weight_T(w_oihw):
    """torch conv weight (Cout, Cin, KH, KW) -> (Cout, KH*KW*Cin), K ordered (i, j, ci)."""
    cout, cin, kh, kw = w_oihw.shape
    return jnp.transpose(w_oihw, (0, 2, 3, 1)).reshape(cout, kh * kw * cin)


# ----------------------------------------------------------------------------
# CifarNet forward
# ----------------------------------------------------------------------------
def cifarnet_forward(x_nchw, params):
    b = x_nchw.shape[0]
    x = jnp.transpose(x_nchw, (0, 2, 3, 1))                        # (B, 32, 32, 3)

    # stage 1: conv1(3->6, 5x5) + relu + 2x2 pool   (one pallas_call)
    p1, ph1, pw1 = im2col_pool_windows_T(x, 5, 5)                  # (4, 75, B*196)
    y1 = conv_relu_pool_pallas(p1, conv_weight_T(params["conv1_w"]),
                               params["conv1_b"])                  # (6, B*196)
    y1 = jnp.transpose(y1.reshape(6, b, ph1, pw1), (1, 2, 3, 0))   # (B, 14, 14, 6)

    # stage 2: conv2(6->16, 5x5) + relu + 2x2 pool  (one pallas_call)
    p2, ph2, pw2 = im2col_pool_windows_T(y1, 5, 5)                 # (4, 150, B*25)
    y2 = conv_relu_pool_pallas(p2, conv_weight_T(params["conv2_w"]),
                               params["conv2_b"])                  # (16, B*25)

    # flatten in torch NCHW order: y2[c, (b*5+h)*5+w] -> feats[b, c*25 + h*5 + w]
    feats = jnp.transpose(y2.reshape(16, b, ph2 * pw2), (1, 0, 2)).reshape(b, 16 * ph2 * pw2)

    # FC stack (one pallas_call); torch Linear: y = x @ W.T + b
    return fc_stack_pallas(feats,
                           params["fc1_w"].T, params["fc1_b"],
                           params["fc2_w"].T, params["fc2_b"],
                           params["fc3_w"].T, params["fc3_b"])     # (B, 10)


# ----------------------------------------------------------------------------
# Pure-JAX reference (for correctness check)
# ----------------------------------------------------------------------------
def reference_forward(x_nchw, params):
    def conv(x, w, bias):
        y = lax.conv_general_dilated(x, w, (1, 1), "VALID",
                                     dimension_numbers=("NCHW", "OIHW", "NCHW"))
        return y + bias[None, :, None, None]

    def pool(x):
        return lax.reduce_window(x, -jnp.inf, lax.max,
                                 (1, 1, 2, 2), (1, 1, 2, 2), "VALID")

    b = x_nchw.shape[0]
    y = pool(jnp.maximum(conv(x_nchw, params["conv1_w"], params["conv1_b"]), 0.0))
    y = pool(jnp.maximum(conv(y, params["conv2_w"], params["conv2_b"]), 0.0))
    y = y.reshape(b, 16 * 5 * 5)
    y = jnp.maximum(y @ params["fc1_w"].T + params["fc1_b"], 0.0)
    y = jnp.maximum(y @ params["fc2_w"].T + params["fc2_b"], 0.0)
    return y @ params["fc3_w"].T + params["fc3_b"]


# ----------------------------------------------------------------------------
# Deterministic parameter init (shapes from CifarNet.__init__)
# ----------------------------------------------------------------------------
def init_params(key):
    def uniform(k, shape, fan_in):
        bound = 1.0 / jnp.sqrt(jnp.float32(fan_in))
        return jax.random.uniform(k, shape, jnp.float32, -bound, bound)

    ks = jax.random.split(key, 10)
    return {
        "conv1_w": uniform(ks[0], (6, 3, 5, 5), 3 * 5 * 5),
        "conv1_b": uniform(ks[1], (6,), 3 * 5 * 5),
        "conv2_w": uniform(ks[2], (16, 6, 5, 5), 6 * 5 * 5),
        "conv2_b": uniform(ks[3], (16,), 6 * 5 * 5),
        "fc1_w": uniform(ks[4], (120, 400), 400),
        "fc1_b": uniform(ks[5], (120,), 400),
        "fc2_w": uniform(ks[6], (84, 120), 120),
        "fc2_b": uniform(ks[7], (84,), 120),
        "fc3_w": uniform(ks[8], (10, 84), 84),
        "fc3_b": uniform(ks[9], (10,), 84),
    }


if __name__ == "__main__":
    key = jax.random.PRNGKey(0)
    pkey, xkey = jax.random.split(key)
    params = init_params(pkey)
    # CifarNet's flatten (16*5*5) fixes the spatial size to 32x32; batch=2.
    x = jax.random.normal(xkey, (2, 3, 32, 32), jnp.float32)

    out = jax.jit(cifarnet_forward)(x, params)
    out = jax.block_until_ready(out)
    assert out.shape == (2, 10) and out.dtype == jnp.float32

    ref = jax.block_until_ready(jax.jit(reference_forward)(x, params))
    assert jnp.allclose(out, ref, atol=1e-4, rtol=1e-4), (
        f"max abs err = {jnp.max(jnp.abs(out - ref))}")

    print("KERNEL_OK")
</pallas_src>

<mosaic_0001>
module attributes {stable_mosaic.version = 11 : i64} {
  func.func @conv_relu_pool_kernel(%arg0: memref<4x75x392xf32, #tpu.memory_space<vmem>>, %arg1: memref<6x75xf32, #tpu.memory_space<vmem>>, %arg2: memref<6x1xf32, #tpu.memory_space<vmem>>, %arg3: memref<6x392xf32, #tpu.memory_space<vmem>>) attributes {dimension_semantics = [], scalar_prefetch = 0 : i64, scratch_operands = 0 : i64, tpu.core_type = #tpu.core_type<tc>} {
    %c0 = arith.constant 0 : index
    %c0_0 = arith.constant 0 : index
    %0 = vector.load %arg1[%c0, %c0_0] : memref<6x75xf32, #tpu.memory_space<vmem>>, vector<6x75xf32>
    %c0_1 = arith.constant 0 : index
    %c0_2 = arith.constant 0 : index
    %1 = vector.load %arg2[%c0_1, %c0_2] : memref<6x1xf32, #tpu.memory_space<vmem>>, vector<6x1xf32>
    %c0_3 = arith.constant 0 : index
    %c0_4 = arith.constant 0 : index
    %c0_5 = arith.constant 0 : index
    %2 = vector.load %arg0[%c0_3, %c0_4, %c0_5] : memref<4x75x392xf32, #tpu.memory_space<vmem>>, vector<1x75x392xf32>
    %3 = vector.shape_cast %2 : vector<1x75x392xf32> to vector<75x392xf32>
    %cst = arith.constant dense<0.000000e+00> : vector<6x392xf32>
    %4 = tpu.matmul %0, %3, %cst {dimension_numbers = #tpu.dot_dimension_numbers<[1], [0], [0], [1], [0, 0, 1, 1], [], []>} : vector<6x75xf32>, vector<75x392xf32>, vector<6x392xf32> -> vector<6x392xf32>
    %5 = vector.broadcast %1 : vector<6x1xf32> to vector<6x392xf32>
    %6 = arith.addf %4, %5 : vector<6x392xf32>
    %cst_6 = arith.constant 0.000000e+00 : f32
    %7 = vector.broadcast %cst_6 : f32 to vector<6x392xf32>
    %8 = arith.maximumf %6, %7 : vector<6x392xf32>
    %c1 = arith.constant 1 : index
    %c0_7 = arith.constant 0 : index
    %c0_8 = arith.constant 0 : index
    %9 = vector.load %arg0[%c1, %c0_7, %c0_8] : memref<4x75x392xf32, #tpu.memory_space<vmem>>, vector<1x75x392xf32>
    %10 = vector.shape_cast %9 : vector<1x75x392xf32> to vector<75x392xf32>
    %cst_9 = arith.constant dense<0.000000e+00> : vector<6x392xf32>
    %11 = tpu.matmul %0, %10, %cst_9 {dimension_numbers = #tpu.dot_dimension_numbers<[1], [0], [0], [1], [0, 0, 1, 1], [], []>} : vector<6x75xf32>, vector<75x392xf32>, vector<6x392xf32> -> vector<6x392xf32>
    %12 = vector.broadcast %1 : vector<6x1xf32> to vector<6x392xf32>
    %13 = arith.addf %11, %12 : vector<6x392xf32>
    %cst_10 = arith.constant 0.000000e+00 : f32
    %14 = vector.broadcast %cst_10 : f32 to vector<6x392xf32>
    %15 = arith.maximumf %13, %14 : vector<6x392xf32>
    %16 = arith.maximumf %8, %15 : vector<6x392xf32>
    %c2 = arith.constant 2 : index
    %c0_11 = arith.constant 0 : index
    %c0_12 = arith.constant 0 : index
    %17 = vector.load %arg0[%c2, %c0_11, %c0_12] : memref<4x75x392xf32, #tpu.memory_space<vmem>>, vector<1x75x392xf32>
    %18 = vector.shape_cast %17 : vector<1x75x392xf32> to vector<75x392xf32>
    %cst_13 = arith.constant dense<0.000000e+00> : vector<6x392xf32>
    %19 = tpu.matmul %0, %18, %cst_13 {dimension_numbers = #tpu.dot_dimension_numbers<[1], [0], [0], [1], [0, 0, 1, 1], [], []>} : vector<6x75xf32>, vector<75x392xf32>, vector<6x392xf32> -> vector<6x392xf32>
    %20 = vector.broadcast %1 : vector<6x1xf32> to vector<6x392xf32>
    %21 = arith.addf %19, %20 : vector<6x392xf32>
    %cst_14 = arith.constant 0.000000e+00 : f32
    %22 = vector.broadcast %cst_14 : f32 to vector<6x392xf32>
    %23 = arith.maximumf %21, %22 : vector<6x392xf32>
    %24 = arith.maximumf %16, %23 : vector<6x392xf32>
    %c3 = arith.constant 3 : index
    %c0_15 = arith.constant 0 : index
    %c0_16 = arith.constant 0 : index
    %25 = vector.load %arg0[%c3, %c0_15, %c0_16] : memref<4x75x392xf32, #tpu.memory_space<vmem>>, vector<1x75x392xf32>
    %26 = vector.shape_cast %25 : vector<1x75x392xf32> to vector<75x392xf32>
    %cst_17 = arith.constant dense<0.000000e+00> : vector<6x392xf32>
    %27 = tpu.matmul %0, %26, %cst_17 {dimension_numbers = #tpu.dot_dimension_numbers<[1], [0], [0], [1], [0, 0, 1, 1], [], []>} : vector<6x75xf32>, vector<75x392xf32>, vector<6x392xf32> -> vector<6x392xf32>
    %28 = vector.broadcast %1 : vector<6x1xf32> to vector<6x392xf32>
    %29 = arith.addf %27, %28 : vector<6x392xf32>
    %cst_18 = arith.constant 0.000000e+00 : f32
    %30 = vector.broadcast %cst_18 : f32 to vector<6x392xf32>
    %31 = arith.maximumf %29, %30 : vector<6x392xf32>
    %32 = arith.maximumf %24, %31 : vector<6x392xf32>
    %c0_19 = arith.constant 0 : index
    %c0_20 = arith.constant 0 : index
    %33 = vector.load %arg3[%c0_19, %c0_20] : memref<6x392xf32, #tpu.memory_space<vmem>>, vector<6x392xf32>
    tpu.vector_store %arg3[%c0_19, %c0_20], %32 {strides = array<i32>} : memref<6x392xf32, #tpu.memory_space<vmem>>, vector<6x392xf32>,
    return
  }
}

module attributes {stable_mosaic.version = 11 : i64} {
  func.func @conv_relu_pool_kernel(%arg0: memref<4x150x50xf32, #tpu.memory_space<vmem>>, %arg1: memref<16x150xf32, #tpu.memory_space<vmem>>, %arg2: memref<16x1xf32, #tpu.memory_space<vmem>>, %arg3: memref<16x50xf32, #tpu.memory_space<vmem>>) attributes {dimension_semantics = [], scalar_prefetch = 0 : i64, scratch_operands = 0 : i64, tpu.core_type = #tpu.core_type<tc>} {
    %c0 = arith.constant 0 : index
    %c0_0 = arith.constant 0 : index
    %0 = vector.load %arg1[%c0, %c0_0] : memref<16x150xf32, #tpu.memory_space<vmem>>, vector<16x150xf32>
    %c0_1 = arith.constant 0 : index
    %c0_2 = arith.constant 0 : index
    %1 = vector.load %arg2[%c0_1, %c0_2] : memref<16x1xf32, #tpu.memory_space<vmem>>, vector<16x1xf32>
    %c0_3 = arith.constant 0 : index
    %c0_4 = arith.constant 0 : index
    %c0_5 = arith.constant 0 : index
    %2 = vector.load %arg0[%c0_3, %c0_4, %c0_5] : memref<4x150x50xf32, #tpu.memory_space<vmem>>, vector<1x150x50xf32>
    %3 = vector.shape_cast %2 : vector<1x150x50xf32> to vector<150x50xf32>
    %cst = arith.constant dense<0.000000e+00> : vector<16x50xf32>
    %4 = tpu.matmul %0, %3, %cst {dimension_numbers = #tpu.dot_dimension_numbers<[1], [0], [0], [1], [0, 0, 1, 1], [], []>} : vector<16x150xf32>, vector<150x50xf32>, vector<16x50xf32> -> vector<16x50xf32>
    %5 = vector.broadcast %1 : vector<16x1xf32> to vector<16x50xf32>
    %6 = arith.addf %4, %5 : vector<16x50xf32>
    %cst_6 = arith.constant 0.000000e+00 : f32
    %7 = vector.broadcast %cst_6 : f32 to vector<16x50xf32>
    %8 = arith.maximumf %6, %7 : vector<16x50xf32>
    %c1 = arith.constant 1 : index
    %c0_7 = arith.constant 0 : index
    %c0_8 = arith.constant 0 : index
    %9 = vector.load %arg0[%c1, %c0_7, %c0_8] : memref<4x150x50xf32, #tpu.memory_space<vmem>>, vector<1x150x50xf32>
    %10 = vector.shape_cast %9 : vector<1x150x50xf32> to vector<150x50xf32>
    %cst_9 = arith.constant dense<0.000000e+00> : vector<16x50xf32>
    %11 = tpu.matmul %0, %10, %cst_9 {dimension_numbers = #tpu.dot_dimension_numbers<[1], [0], [0], [1], [0, 0, 1, 1], [], []>} : vector<16x150xf32>, vector<150x50xf32>, vector<16x50xf32> -> vector<16x50xf32>
    %12 = vector.broadcast %1 : vector<16x1xf32> to vector<16x50xf32>
    %13 = arith.addf %11, %12 : vector<16x50xf32>
    %cst_10 = arith.constant 0.000000e+00 : f32
    %14 = vector.broadcast %cst_10 : f32 to vector<16x50xf32>
    %15 = arith.maximumf %13, %14 : vector<16x50xf32>
    %16 = arith.maximumf %8, %15 : vector<16x50xf32>
    %c2 = arith.constant 2 : index
    %c0_11 = arith.constant 0 : index
    %c0_12 = arith.constant 0 : index
    %17 = vector.load %arg0[%c2, %c0_11, %c0_12] : memref<4x150x50xf32, #tpu.memory_space<vmem>>, vector<1x150x50xf32>
    %18 = vector.shape_cast %17 : vector<1x150x50xf32> to vector<150x50xf32>
    %cst_13 = arith.constant dense<0.000000e+00> : vector<16x50xf32>
    %19 = tpu.matmul %0, %18, %cst_13 {dimension_numbers = #tpu.dot_dimension_numbers<[1], [0], [0], [1], [0, 0, 1, 1], [], []>} : vector<16x150xf32>, vector<150x50xf32>, vector<16x50xf32> -> vector<16x50xf32>
    %20 = vector.broadcast %1 : vector<16x1xf32> to vector<16x50xf32>
    %21 = arith.addf %19, %20 : vector<16x50xf32>
    %cst_14 = arith.constant 0.000000e+00 : f32
    %22 = vector.broadcast %cst_14 : f32 to vector<16x50xf32>
    %23 = arith.maximumf %21, %22 : vector<16x50xf32>
    %24 = arith.maximumf %16, %23 : vector<16x50xf32>
    %c3 = arith.constant 3 : index
    %c0_15 = arith.constant 0 : index
    %c0_16 = arith.constant 0 : index
    %25 = vector.load %arg0[%c3, %c0_15, %c0_16] : memref<4x150x50xf32, #tpu.memory_space<vmem>>, vector<1x150x50xf32>
    %26 = vector.shape_cast %25 : vector<1x150x50xf32> to vector<150x50xf32>
    %cst_17 = arith.constant dense<0.000000e+00> : vector<16x50xf32>
    %27 = tpu.matmul %0, %26, %cst_17 {dimension_numbers = #tpu.dot_dimension_numbers<[1], [0], [0], [1], [0, 0, 1, 1], [], []>} : vector<16x150xf32>, vector<150x50xf32>, vector<16x50xf32> -> vector<16x50xf32>
    %28 = vector.broadcast %1 : vector<16x1xf32> to vector<16x50xf32>
    %29 = arith.addf %27, %28 : vector<16x50xf32>
    %cst_18 = arith.constant 0.000000e+00 : f32
    %30 = vector.broadcast %cst_18 : f32 to vector<16x50xf32>
    %31 = arith.maximumf %29, %30 : vector<16x50xf32>
    %32 = arith.maximumf %24, %31 : vector<16x50xf32>
    %c0_19 = arith.constant 0 : index
    %c0_20 = arith.constant 0 : index
    %33 = vector.load %arg3[%c0_19, %c0_20] : memref<16x50xf32, #tpu.memory_space<vmem>>, vector<16x50xf32>
    tpu.vector_store %arg3[%c0_19, %c0_20], %32 {strides = array<i32>} : memref<16x50xf32, #tpu.memory_space<vmem>>, vector<16x50xf32>,
    return
  }
}

module attributes {stable_mosaic.version = 11 : i64} {
  func.func @fc_stack_kernel(%arg0: memref<2x400xf32, #tpu.memory_space<vmem>>, %arg1: memref<400x120xf32, #tpu.memory_space<vmem>>, %arg2: memref<1x120xf32, #tpu.memory_space<vmem>>, %arg3: memref<120x84xf32, #tpu.memory_space<vmem>>, %arg4: memref<1x84xf32, #tpu.memory_space<vmem>>, %arg5: memref<84x10xf32, #tpu.memory_space<vmem>>, %arg6: memref<1x10xf32, #tpu.memory_space<vmem>>, %arg7: memref<2x10xf32, #tpu.memory_space<vmem>>) attributes {dimension_semantics = [], scalar_prefetch = 0 : i64, scratch_operands = 0 : i64, tpu.core_type = #tpu.core_type<tc>} {
    %c0 = arith.constant 0 : index
    %c0_0 = arith.constant 0 : index
    %0 = vector.load %arg0[%c0, %c0_0] : memref<2x400xf32, #tpu.memory_space<vmem>>, vector<2x400xf32>
    %c0_1 = arith.constant 0 : index
    %c0_2 = arith.constant 0 : index
    %1 = vector.load %arg1[%c0_1, %c0_2] : memref<400x120xf32, #tpu.memory_space<vmem>>, vector<400x120xf32>
    %cst = arith.constant dense<0.000000e+00> : vector<2x120xf32>
    %2 = tpu.matmul %0, %1, %cst {dimension_numbers = #tpu.dot_dimension_numbers<[1], [0], [0], [1], [0, 0, 1, 1], [], []>} : vector<2x400xf32>, vector<400x120xf32>, vector<2x120xf32> -> vector<2x120xf32>
    %c0_3 = arith.constant 0 : index
    %c0_4 = arith.constant 0 : index
    %3 = vector.load %arg2[%c0_3, %c0_4] : memref<1x120xf32, #tpu.memory_space<vmem>>, vector<1x120xf32>
    %4 = vector.broadcast %3 : vector<1x120xf32> to vector<2x120xf32>
    %5 = arith.addf %2, %4 : vector<2x120xf32>
    %cst_5 = arith.constant 0.000000e+00 : f32
    %6 = vector.broadcast %cst_5 : f32 to vector<2x120xf32>
    %7 = arith.maximumf %5, %6 : vector<2x120xf32>
    %c0_6 = arith.constant 0 : index
    %c0_7 = arith.constant 0 : index
    %8 = vector.load %arg3[%c0_6, %c0_7] : memref<120x84xf32, #tpu.memory_space<vmem>>, vector<120x84xf32>
    %cst_8 = arith.constant dense<0.000000e+00> : vector<2x84xf32>
    %9 = tpu.matmul %7, %8, %cst_8 {dimension_numbers = #tpu.dot_dimension_numbers<[1], [0], [0], [1], [0, 0, 1, 1], [], []>} : vector<2x120xf32>, vector<120x84xf32>, vector<2x84xf32> -> vector<2x84xf32>
    %c0_9 = arith.constant 0 : index
    %c0_10 = arith.constant 0 : index
    %10 = vector.load %arg4[%c0_9, %c0_10] : memref<1x84xf32, #tpu.memory_space<vmem>>, vector<1x84xf32>
    %11 = vector.broadcast %10 : vector<1x84xf32> to vector<2x84xf32>
    %12 = arith.addf %9, %11 : vector<2x84xf32>
    %cst_11 = arith.constant 0.000000e+00 : f32
    %13 = vector.broadcast %cst_11 : f32 to vector<2x84xf32>
    %14 = arith.maximumf %12, %13 : vector<2x84xf32>
    %c0_12 = arith.constant 0 : index
    %c0_13 = arith.constant 0 : index
    %15 = vector.load %arg5[%c0_12, %c0_13] : memref<84x10xf32, #tpu.memory_space<vmem>>, vector<84x10xf32>
    %cst_14 = arith.constant dense<0.000000e+00> : vector<2x10xf32>
    %16 = tpu.matmul %14, %15, %cst_14 {dimension_numbers = #tpu.dot_dimension_numbers<[1], [0], [0], [1], [0, 0, 1, 1], [], []>} : vector<2x84xf32>, vector<84x10xf32>, vector<2x10xf32> -> vector<2x10xf32>
    %c0_15 = arith.constant 0 : index
    %c0_16 = arith.constant 0 : index
    %17 = vector.load %arg6[%c0_15, %c0_16] : memref<1x10xf32, #tpu.memory_space<vmem>>, vector<1x10xf32>
    %18 = vector.broadcast %17 : vector<1x10xf32> to vector<2x10xf32>
    %19 = arith.addf %16, %18 : vector<2x10xf32>
    %c0_17 = arith.constant 0 : index
    %c0_18 = arith.constant 0 : index
    %20 = vector.load %arg7[%c0_17, %c0_18] : memref<2x10xf32, #tpu.memory_space<vmem>>, vector<2x10xf32>
    tpu.vector_store %arg7[%c0_17, %c0_18], %19 {strides = array<i32>} : memref<2x10xf32, #tpu.memory_space<vmem>>, vector<2x10xf32>,
    return
  }
}

</mosaic_0001>

<bundles_post_ra>
// kernel: cifarnet_forward.3
= control target key start
LH: loop header
LB: loop body
LE: loop exit
PB: predicated region body
PF: predicated region fallthrough
CT: control target
= control target key end

     0   :  { %v1166_v3 = vmov 0.0   ;;  %v1167_v8 = vmov 0   ;;  %vm65_vm0 = vcmask 1042432   ;;  %vm1168_vm1 = vmmov 1   ;;  %s1749_s0 = inlined_call_operand.vmem [shape: f32[4,75,392], index: 0, kind: input, shape index: {}]   ;;  %s1750_s1 = inlined_call_operand.vmem [shape: f32[6,75], index: 1, kind: input, shape index: {}]   ;;  %s1751_s2 = inlined_call_operand.vmem [shape: f32[6,1], index: 2, kind: input, shape index: {}]   ;;  %s1752_s3 = inlined_call_operand.vmem [shape: f32[6,392], index: 3, kind: output, shape index: {}]  }
   0x1   :  { %v17_v0 = vld [vmem:[%s1749_s0 + $0x8] sm:$0xff]  ;;  %v19_v2 = vld [vmem:[%s1749_s0 + $0x18] sm:$0xff]  ;;  %142 = vmatprep.mubr.f32.mxu0 %v1166_v3  ;;  %213 = vmatprep.mubr.f32.mxu1 %v1166_v3  ;;  %v16_v6 = vld [vmem:[%s1749_s0] sm:$0xff]  ;;  %vm61_vm3 = vcmask 613376   ;;  %vm836_vm4 = vcmask 62464  }
   0x2   :  { %v21_v1 = vld [vmem:[%s1749_s0 + $0x28] sm:$0xff]  ;;  %v23_v5 = vld [vmem:[%s1749_s0 + $0x38] sm:$0xff]  ;;  %v20_v7 = vld [vmem:[%s1749_s0 + $0x20] sm:$0xff]  ;;  %1165 = vset.pattern.permute.xlu0 %v1167_v8 }
   0x3   :  { %v986_v4 = vpack.c.bf16 %v21_v1, %v17_v0  ;;  %v1008_v9 = vpack.c.bf16 %v23_v5, %v19_v2  ;;  %v988_v10 = vpack.c.bf16 %v20_v7, %v16_v6  ;;  %v18_v11 = vld [vmem:[%s1749_s0 + $0x10] sm:$0xff]  ;;  %v25_v13 = vld [vmem:[%s1749_s0 + $0x48] sm:$0xff]  ;;  %v27_v16 = vld [vmem:[%s1749_s0 + $0x58] sm:$0xff] }
   0x4   :  { %v22_v12 = vld [vmem:[%s1749_s0 + $0x30] sm:$0xff]  ;;  %v29_v15 = vld [vmem:[%s1749_s0 + $0x68] sm:$0xff]  ;;  %v31_v17 = vld [vmem:[%s1749_s0 + $0x78] sm:$0xff] }
   0x5   :  { %987 = vmatprep.subr.bf16.mxu0 %v986_v4  ;;  %v1010_v14 = vpack.c.bf16 %v22_v12, %v18_v11  ;;  %1009 = vmatprep.subr.bf16.mxu1 %v1008_v9  ;;  %v990_v18 = vpack.c.bf16 %v29_v15, %v25_v13  ;;  %v1012_v19 = vpack.c.bf16 %v31_v17, %v27_v16  ;;  %v24_v20 = vld [vmem:[%s1749_s0 + $0x40] sm:$0xff]  ;;  %v26_v22 = vld [vmem:[%s1749_s0 + $0x50] sm:$0xff]  ;;  %v33_v25 = vld [vmem:[%s1749_s0 + $0x88] sm:$0xff] }
   0x6   :  { %989 = vmatpush1.bf16.msra.mxu0 %v988_v10  ;;  %v28_v21 = vld [vmem:[%s1749_s0 + $0x60] sm:$0xff]  ;;  %v30_v24 = vld [vmem:[%s1749_s0 + $0x70] sm:$0xff]  ;;  %v37_v26 = vld [vmem:[%s1749_s0 + $0xa8] sm:$0xff] }
   0x7   :  { %1011 = vmatpush1.bf16.msra.mxu1 %v1010_v14  ;;  %v992_v23 = vpack.c.bf16 %v28_v21, %v24_v20  ;;  %991 = vmatprep.subr.bf16.mxu0 %v990_v18  ;;  %v1014_v27 = vpack.c.bf16 %v30_v24, %v26_v22  ;;  %v994_v28 = vpack.c.bf16 %v37_v26, %v33_v25  ;;  %v35_v29 = vld [vmem:[%s1749_s0 + $0x98] sm:$0xff]  ;;  %v32_v31 = vld [vmem:[%s1749_s0 + $0x80] sm:$0xff]  ;;  %v34_v34 = vld [vmem:[%s1749_s0 + $0x90] sm:$0xff] }
   0x8   :  { %1013 = vmatprep.subr.bf16.mxu1 %v1012_v19  ;;  %v39_v30 = vld [vmem:[%s1749_s0 + $0xb8] sm:$0xff]  ;;  %v36_v33 = vld [vmem:[%s1749_s0 + $0xa0] sm:$0xff]  ;;  %v38_v35 = vld [vmem:[%s1749_s0 + $0xb0] sm:$0xff] }
   0x9   :  { %v1016_v32 = vpack.c.bf16 %v39_v30, %v35_v29  ;;  %v996_v36 = vpack.c.bf16 %v36_v33, %v32_v31  ;;  %v41_v37 = vld [vmem:[%s1749_s0 + $0xc8] sm:$0xff]  ;;  %v43_v39 = vld [vmem:[%s1749_s0 + $0xd8] sm:$0xff]  ;;  %v1018_v40 = vpack.c.bf16 %v38_v35, %v34_v34  ;;  %v40_v43 = vld [vmem:[%s1749_s0 + $0xc0] sm:$0xff] }
   0xa   :  { %993 = vmatpush1.bf16.msra.mxu0 %v992_v23  ;;  %v45_v38 = vld [vmem:[%s1749_s0 + $0xe8] sm:$0xff]  ;;  %v47_v42 = vld [vmem:[%s1749_s0 + $0xf8] sm:$0xff]  ;;  %v44_v44 = vld [vmem:[%s1749_s0 + $0xe0] sm:$0xff] }
   0xb   :  { %1015 = vmatpush1.bf16.msra.mxu1 %v1014_v27  ;;  %995 = vmatprep.subr.bf16.mxu0 %v994_v28  ;;  %v998_v41 = vpack.c.bf16 %v45_v38, %v41_v37  ;;  %v1020_v45 = vpack.c.bf16 %v47_v42, %v43_v39  ;;  %v42_v46 = vld [vmem:[%s1749_s0 + $0xd0] sm:$0xff]  ;;  %v49_v48 = vld [vmem:[%s1749_s0 + $0x108] sm:$0xff]  ;;  %v51_v50 = vld [vmem:[%s1749_s0 + $0x118] sm:$0xff]  ;;  %v1000_v51 = vpack.c.bf16 %v44_v44, %v40_v43 }
   0xc   :  { %1017 = vmatprep.subr.bf16.mxu1 %v1016_v32  ;;  %v46_v47 = vld [vmem:[%s1749_s0 + $0xf0] sm:$0xff]  ;;  %v53_v49 = vld [vmem:[%s1749_s0 + $0x128] sm:$0x7]  ;;  %vm1296_vm2 = vmpackc.low %vm65_vm0, %vm1168_vm1 }
   0xd   :  { %v55_v53 = vld [vmem:[%s1749_s0 + $0x138] sm:$0x7]  ;;  %v1022_v54 = vpack.c.bf16 %v46_v47, %v42_v46  ;;  %v1002_v55 = vpack.c.bf16 %v53_v49, %v49_v48  ;;  %v48_v56 = vld [vmem:[%s1749_s0 + $0x100] sm:$0xff]  ;;  %v50_v58 = vld [vmem:[%s1749_s0 + $0x110] sm:$0xff] }
   0xe   :  { %997 = vmatpush1.bf16.msra.mxu0 %v996_v36  ;;  %v52_v57 = vld [vmem:[%s1749_s0 + $0x120] sm:$0x7]  ;;  %v1024_v59 = vpack.c.bf16 %v55_v53, %v51_v50  ;;  %v54_v60 = vld [vmem:[%s1749_s0 + $0x130] sm:$0x7]  ;;  %v849_v61 = vld [vmem:[%s1749_s0 + $0x148] sm:$0xff] }
   0xf   :  { %1019 = vmatpush1.bf16.msra.mxu1 %v1018_v40  ;;  %999 = vmatprep.subr.bf16.mxu0 %v998_v41  ;;  %v853_v62 = vld [vmem:[%s1749_s0 + $0x168] sm:$0xff]  ;;  %v851_v63 = vld [vmem:[%s1749_s0 + $0x158] sm:$0xff]  ;;  %v1005_v1 = vpack.c.bf16 %v52_v57, %v48_v56  ;;  %v1027_v2 = vpack.c.bf16 %v54_v60, %v50_v58  ;;  %v848_v5 = vld [vmem:[%s1749_s0 + $0x140] sm:$0xff] }
  0x10   :  { %1021 = vmatprep.subr.bf16.mxu1 %v1020_v45  ;;  %v855_v0 = vld [vmem:[%s1749_s0 + $0x178] sm:$0xff]  ;;  %v1030_v4 = vpack.c.bf16 %v853_v62, %v849_v61  ;;  %v852_v6 = vld [vmem:[%s1749_s0 + $0x160] sm:$0xff]  ;;  %v850_v7 = vld [vmem:[%s1749_s0 + $0x150] sm:$0xff] }
  0x11   :  { %v1052_v8 = vpack.c.bf16 %v855_v0, %v851_v63  ;;  %v854_v9 = vld [vmem:[%s1749_s0 + $0x170] sm:$0xff]  ;;  %v857_v10 = vld [vmem:[%s1749_s0 + $0x188] sm:$0xff]  ;;  %v859_v12 = vld [vmem:[%s1749_s0 + $0x198] sm:$0xff]  ;;  %v1032_v15 = vpack.c.bf16 %v852_v6, %v848_v5 }
  0x12   :  { %1001 = vmatpush1.bf16.msra.mxu0 %v1000_v51  ;;  %v861_v11 = vld [vmem:[%s1749_s0 + $0x1a8] sm:$0xff]  ;;  %v863_v13 = vld [vmem:[%s1749_s0 + $0x1b8] sm:$0xff]  ;;  %v1360_v14 = vld [vmem:[%s1750_s1] sm:$0x3f]  ;;  %v1054_v16 = vpack.c.bf16 %v854_v9, %v850_v7 }
  0x13   :  { %1023 = vmatpush1.bf16.msra.mxu1 %v1022_v54  ;;  %1004 = vmatprep.subr.msk.bf16.mxu0 %vm1296_vm2, %v1002_v55  ;;  %v1034_v17 = vpack.c.bf16 %v861_v11, %v857_v10  ;;  %v856_v18 = vld [vmem:[%s1749_s0 + $0x180] sm:$0xff]  ;;  %v858_v20 = vld [vmem:[%s1749_s0 + $0x190] sm:$0xff]  ;;  %v1056_v21 = vpack.c.bf16 %v863_v13, %v859_v12  ;;  %v865_v23 = vld [vmem:[%s1749_s0 + $0x1c8] sm:$0xff] }
  0x14   :  { %1026 = vmatprep.subr.msk.bf16.mxu1 %vm1296_vm2, %v1024_v59  ;;  %v860_v19 = vld [vmem:[%s1749_s0 + $0x1a0] sm:$0xff]  ;;  %v862_v22 = vld [vmem:[%s1749_s0 + $0x1b0] sm:$0xff]  ;;  %v869_v24 = vld [vmem:[%s1749_s0 + $0x1e8] sm:$0xff] }
  0x15   :  { %v867_v25 = vld [vmem:[%s1749_s0 + $0x1d8] sm:$0xff]  ;;  %v1036_v27 = vpack.c.bf16 %v860_v19, %v856_v18  ;;  %v1058_v28 = vpack.c.bf16 %v862_v22, %v858_v20  ;;  %v1038_v29 = vpack.c.bf16 %v869_v24, %v865_v23  ;;  %v864_v30 = vld [vmem:[%s1749_s0 + $0x1c0] sm:$0xff]  ;;  %v866_v32 = vld [vmem:[%s1749_s0 + $0x1d0] sm:$0xff] }
  0x16   :  { %1007 = vmatpush1.bf16.msk.msra.mxu0 %vm1296_vm2, %v1005_v1  ;;  %v871_v26 = vld [vmem:[%s1749_s0 + $0x1f8] sm:$0xff]  ;;  %v868_v31 = vld [vmem:[%s1749_s0 + $0x1e0] sm:$0xff]  ;;  %v870_v34 = vld [vmem:[%s1749_s0 + $0x1f0] sm:$0xff] }
  0x17   :  { %1029 = vmatpush1.bf16.msk.msra.mxu1 %vm1296_vm2, %v1027_v2  ;;  %1031 = vmatprep.subr.bf16.mxu0 %v1030_v4  ;;  %v1060_v33 = vpack.c.bf16 %v871_v26, %v867_v25  ;;  %v873_v35 = vld [vmem:[%s1749_s0 + $0x208] sm:$0xff]  ;;  %v875_v37 = vld [vmem:[%s1749_s0 + $0x218] sm:$0xff]  ;;  %v1040_v39 = vpack.c.bf16 %v868_v31, %v864_v30  ;;  %v1062_v40 = vpack.c.bf16 %v870_v34, %v866_v32  ;;  %v872_v42 = vld [vmem:[%s1749_s0 + $0x200] sm:$0xff] }
  0x18   :  { %1053 = vmatprep.subr.bf16.mxu1 %v1052_v8  ;;  %v877_v36 = vld [vmem:[%s1749_s0 + $0x228] sm:$0xff]  ;;  %v879_v38 = vld [vmem:[%s1749_s0 + $0x238] sm:$0xff]  ;;  %v876_v43 = vld [vmem:[%s1749_s0 + $0x220] sm:$0xff] }
  0x19   :  { %844 = vmatmul.mubr.msk.f32.vlgmr.msra.gmra.mrb[0].mxu0 %vm61_vm3, %v1360_v14  ;;  %v1042_v41 = vpack.c.bf16 %v877_v36, %v873_v35  ;;  %v874_v44 = vld [vmem:[%s1749_s0 + $0x210] sm:$0xff]  ;;  %v1064_v45 = vpack.c.bf16 %v879_v38, %v875_v37  ;;  %v881_v47 = vld [vmem:[%s1749_s0 + $0x248] sm:$0xff]  ;;  %v883_v49 = vld [vmem:[%s1749_s0 + $0x258] sm:$0xff]  ;;  %v1044_v51 = vpack.c.bf16 %v876_v43, %v872_v42 }
  0x1a   :  { %847 = vmatmul.mubr.msk.f32.vlgmr.msra.gmra.mrb[0].mxu1 %vm61_vm3, %v1360_v14  ;;  %1033 = vmatpush1.bf16.msra.mxu0 %v1032_v15  ;;  %v878_v46 = vld [vmem:[%s1749_s0 + $0x230] sm:$0xff]  ;;  %v885_v48 = vld [vmem:[%s1749_s0 + $0x268] sm:$0x7]  ;;  %v887_v50 = vld [vmem:[%s1749_s0 + $0x278] sm:$0x7] }
  0x1b   :  { %1055 = vmatpush1.bf16.msra.mxu1 %v1054_v16  ;;  %1035 = vmatprep.subr.bf16.mxu0 %v1034_v17  ;;  %v1066_v53 = vpack.c.bf16 %v878_v46, %v874_v44  ;;  %v1046_v54 = vpack.c.bf16 %v885_v48, %v881_v47  ;;  %v880_v55 = vld [vmem:[%s1749_s0 + $0x240] sm:$0xff]  ;;  %v882_v57 = vld [vmem:[%s1749_s0 + $0x250] sm:$0xff]  ;;  %v1068_v58 = vpack.c.bf16 %v887_v50, %v883_v49  ;;  %v895_v60 = vld [vmem:[%s1749_s0 + $0x288] sm:$0xff] }
  0x1c   :  { %1057 = vmatprep.subr.bf16.mxu1 %v1056_v21  ;;  %341 = vmatprep.mubr.f32.mxu0 %v1166_v3  ;;  %v884_v56 = vld [vmem:[%s1749_s0 + $0x260] sm:$0x7]  ;;  %v886_v59 = vld [vmem:[%s1749_s0 + $0x270] sm:$0x7]  ;;  %v899_v61 = vld [vmem:[%s1749_s0 + $0x2a8] sm:$0xff] }
  0x1d   :  { %412 = vmatprep.mubr.f32.mxu1 %v1166_v3  ;;  %v897_v62 = vld [vmem:[%s1749_s0 + $0x298] sm:$0xff]  ;;  %v1049_v0 = vpack.c.bf16 %v884_v56, %v880_v55  ;;  %v1071_v1 = vpack.c.bf16 %v886_v59, %v882_v57  ;;  %v1074_v2 = vpack.c.bf16 %v899_v61, %v895_v60  ;;  %v894_v4 = vld [vmem:[%s1749_s0 + $0x280] sm:$0xff]  ;;  %v896_v6 = vld [vmem:[%s1749_s0 + $0x290] sm:$0xff] }
  0x1e   :  { %1037 = vmatpush1.bf16.msra.mxu0 %v1036_v27  ;;  %v901_v63 = vld [vmem:[%s1749_s0 + $0x2b8] sm:$0xff]  ;;  %v898_v5 = vld [vmem:[%s1749_s0 + $0x2a0] sm:$0xff]  ;;  %v900_v8 = vld [vmem:[%s1749_s0 + $0x2b0] sm:$0xff] }
  0x1f   :  { %1059 = vmatpush1.bf16.msra.mxu1 %v1058_v28  ;;  %1039 = vmatprep.subr.bf16.mxu0 %v1038_v29  ;;  %v1096_v7 = vpack.c.bf16 %v901_v63, %v897_v62  ;;  %v903_v9 = vld [vmem:[%s1749_s0 + $0x2c8] sm:$0xff]  ;;  %v905_v11 = vld [vmem:[%s1749_s0 + $0x2d8] sm:$0xff]  ;;  %v1076_v13 = vpack.c.bf16 %v898_v5, %v894_v4  ;;  %v1098_v15 = vpack.c.bf16 %v900_v8, %v896_v6  ;;  %v902_v17 = vld [vmem:[%s1749_s0 + $0x2c0] sm:$0xff] }
  0x20   :  { %1061 = vmatprep.subr.bf16.mxu1 %v1060_v33  ;;  %v907_v10 = vld [vmem:[%s1749_s0 + $0x2e8] sm:$0xff]  ;;  %v909_v12 = vld [vmem:[%s1749_s0 + $0x2f8] sm:$0xff]  ;;  %v906_v18 = vld [vmem:[%s1749_s0 + $0x2e0] sm:$0xff] }
  0x21   :  { %v1078_v16 = vpack.c.bf16 %v907_v10, %v903_v9  ;;  %v904_v19 = vld [vmem:[%s1749_s0 + $0x2d0] sm:$0xff]  ;;  %v1100_v20 = vpack.c.bf16 %v909_v12, %v905_v11  ;;  %v911_v22 = vld [vmem:[%s1749_s0 + $0x308] sm:$0xff]  ;;  %v913_v24 = vld [vmem:[%s1749_s0 + $0x318] sm:$0xff]  ;;  %v1080_v26 = vpack.c.bf16 %v906_v18, %v902_v17 }
  0x22   :  { %1041 = vmatpush1.bf16.msra.mxu0 %v1040_v39  ;;  %v908_v21 = vld [vmem:[%s1749_s0 + $0x2f0] sm:$0xff]  ;;  %v915_v23 = vld [vmem:[%s1749_s0 + $0x328] sm:$0xff]  ;;  %v917_v25 = vld [vmem:[%s1749_s0 + $0x338] sm:$0xff] }
  0x23   :  { %1063 = vmatpush1.bf16.msra.mxu1 %v1062_v40  ;;  %1043 = vmatprep.subr.bf16.mxu0 %v1042_v41  ;;  %v1102_v27 = vpack.c.bf16 %v908_v21, %v904_v19  ;;  %v1082_v28 = vpack.c.bf16 %v915_v23, %v911_v22  ;;  %v910_v29 = vld [vmem:[%s1749_s0 + $0x300] sm:$0xff]  ;;  %v912_v31 = vld [vmem:[%s1749_s0 + $0x310] sm:$0xff]  ;;  %v1104_v32 = vpack.c.bf16 %v917_v25, %v913_v24  ;;  %v919_v34 = vld [vmem:[%s1749_s0 + $0x348] sm:$0xff] }
  0x24   :  { %1065 = vmatprep.subr.bf16.mxu1 %v1064_v45  ;;  %v914_v30 = vld [vmem:[%s1749_s0 + $0x320] sm:$0xff]  ;;  %v916_v33 = vld [vmem:[%s1749_s0 + $0x330] sm:$0xff]  ;;  %v923_v35 = vld [vmem:[%s1749_s0 + $0x368] sm:$0xff] }
  0x25   :  { %v921_v36 = vld [vmem:[%s1749_s0 + $0x358] sm:$0xff]  ;;  %v1084_v38 = vpack.c.bf16 %v914_v30, %v910_v29  ;;  %v1106_v39 = vpack.c.bf16 %v916_v33, %v912_v31  ;;  %v1086_v40 = vpack.c.bf16 %v923_v35, %v919_v34  ;;  %v918_v41 = vld [vmem:[%s1749_s0 + $0x340] sm:$0xff]  ;;  %v920_v43 = vld [vmem:[%s1749_s0 + $0x350] sm:$0xff] }
  0x26   :  { %1045 = vmatpush1.bf16.msra.mxu0 %v1044_v51  ;;  %v925_v37 = vld [vmem:[%s1749_s0 + $0x378] sm:$0xff]  ;;  %v922_v42 = vld [vmem:[%s1749_s0 + $0x360] sm:$0xff]  ;;  %v924_v45 = vld [vmem:[%s1749_s0 + $0x370] sm:$0xff] }
  0x27   :  { %1067 = vmatpush1.bf16.msra.mxu1 %v1066_v53  ;;  %1048 = vmatprep.subr.msk.bf16.mxu0 %vm1296_vm2, %v1046_v54  ;;  %v1108_v44 = vpack.c.bf16 %v925_v37, %v921_v36  ;;  %v927_v46 = vld [vmem:[%s1749_s0 + $0x388] sm:$0xff]  ;;  %v929_v48 = vld [vmem:[%s1749_s0 + $0x398] sm:$0xff]  ;;  %v1088_v50 = vpack.c.bf16 %v922_v42, %v918_v41  ;;  %v926_v51 = vld [vmem:[%s1749_s0 + $0x380] sm:$0xff]  ;;  %v1110_v53 = vpack.c.bf16 %v924_v45, %v920_v43 }
  0x28   :  { %1070 = vmatprep.subr.msk.bf16.mxu1 %vm1296_vm2, %v1068_v58  ;;  %v931_v47 = vld [vmem:[%s1749_s0 + $0x3a8] sm:$0x7]  ;;  %v933_v49 = vld [vmem:[%s1749_s0 + $0x3b8] sm:$0x7]  ;;  %v930_v55 = vld [vmem:[%s1749_s0 + $0x3a0] sm:$0x7] }
  0x29   :  { %v1090_v54 = vpack.c.bf16 %v931_v47, %v927_v46  ;;  %v928_v56 = vld [vmem:[%s1749_s0 + $0x390] sm:$0xff]  ;;  %v1112_v58 = vpack.c.bf16 %v933_v49, %v929_v48  ;;  %v941_v59 = vld [vmem:[%s1749_s0 + $0x3c8] sm:$0xff]  ;;  %v15_v61 = vld [vmem:[%s1751_s2] sm:$0x3f] }
  0x2a   :  { %1051 = vmatpush1.bf16.msk.msra.mxu0 %vm1296_vm2, %v1049_v0  ;;  %v932_v57 = vld [vmem:[%s1749_s0 + $0x3b0] sm:$0x7]  ;;  %v945_v60 = vld [vmem:[%s1749_s0 + $0x3e8] sm:$0xff]  ;;  %v943_v62 = vld [vmem:[%s1749_s0 + $0x3d8] sm:$0xff]  ;;  %58 = vperm.xlu0 %1165, %v15_v61   ;;  %v1093_v0 = vpack.c.bf16 %v930_v55, %v926_v51 }
  0x2b   :  { %1073 = vmatpush1.bf16.msk.msra.mxu1 %vm1296_vm2, %v1071_v1  ;;  %1075 = vmatprep.subr.bf16.mxu0 %v1074_v2  ;;  %v947_v63 = vld [vmem:[%s1749_s0 + $0x3f8] sm:$0xff]  ;;  %v1115_v1 = vpack.c.bf16 %v932_v57, %v928_v56  ;;  %v1118_v2 = vpack.c.bf16 %v945_v60, %v941_v59  ;;  %v940_v4 = vld [vmem:[%s1749_s0 + $0x3c0] sm:$0xff]  ;;  %v942_v6 = vld [vmem:[%s1749_s0 + $0x3d0] sm:$0xff] }
  0x2c   :  { %1097 = vmatprep.subr.bf16.mxu1 %v1096_v7  ;;  %v944_v5 = vld [vmem:[%s1749_s0 + $0x3e0] sm:$0xff]  ;;  %v1140_v7 = vpack.c.bf16 %v947_v63, %v943_v62  ;;  %v946_v8 = vld [vmem:[%s1749_s0 + $0x3f0] sm:$0xff]  ;;  %v949_v9 = vld [vmem:[%s1749_s0 + $0x408] sm:$0xff] }
  0x2d   :  { %890 = vmatmul.mubr.msk.f32.vlgmr.msra.gmra.mrb[2].mxu0 %vm61_vm3, %v1360_v14  ;;  %v953_v10 = vld [vmem:[%s1749_s0 + $0x428] sm:$0xff]  ;;  %v951_v11 = vld [vmem:[%s1749_s0 + $0x418] sm:$0xff]  ;;  %v948_v17 = vld [vmem:[%s1749_s0 + $0x400] sm:$0xff] }
  0x2e   :  { %893 = vmatmul.mubr.msk.f32.vlgmr.msra.gmra.mrb[2].mxu1 %vm61_vm3, %v1360_v14  ;;  %1077 = vmatpush1.bf16.msra.mxu0 %v1076_v13  ;;  %v955_v12 = vld [vmem:[%s1749_s0 + $0x438] sm:$0xff]  ;;  %v1120_v13 = vpack.c.bf16 %v944_v5, %v940_v4  ;;  %v952_v18 = vld [vmem:[%s1749_s0 + $0x420] sm:$0xff]  ;;  %v950_v19 = vld [vmem:[%s1749_s0 + $0x410] sm:$0xff] }
  0x2f   :  { %1099 = vmatpush1.bf16.msra.mxu1 %v1098_v15  ;;  %1079 = vmatprep.subr.bf16.mxu0 %v1078_v16  ;;  %v1142_v15 = vpack.c.bf16 %v946_v8, %v942_v6  ;;  %v1122_v16 = vpack.c.bf16 %v953_v10, %v949_v9  ;;  %v954_v21 = vld [vmem:[%s1749_s0 + $0x430] sm:$0xff]  ;;  %v957_v22 = vld [vmem:[%s1749_s0 + $0x448] sm:$0xff]  ;;  %v959_v24 = vld [vmem:[%s1749_s0 + $0x458] sm:$0xff] }
  0x30   :  { %1101 = vmatprep.subr.bf16.mxu1 %v1100_v20  ;;  %544 = vmatprep.mubr.f32.mxu0 %v1166_v3  ;;  %v1144_v20 = vpack.c.bf16 %v955_v12, %v951_v11  ;;  %v961_v23 = vld [vmem:[%s1749_s0 + $0x468] sm:$0xff]  ;;  %v963_v25 = vld [vmem:[%s1749_s0 + $0x478] sm:$0xff]  ;;  %v956_v29 = vld [vmem:[%s1749_s0 + $0x440] sm:$0xff] }
  0x31   :  { %615 = vmatprep.mubr.f32.mxu1 %v1166_v3  ;;  %v960_v30 = vld [vmem:[%s1749_s0 + $0x460] sm:$0xff]  ;;  %v958_v31 = vld [vmem:[%s1749_s0 + $0x450] sm:$0xff]  ;;  %v965_v34 = vld [vmem:[%s1749_s0 + $0x488] sm:$0xff] }
  0x32   :  { %1081 = vmatpush1.bf16.msra.mxu0 %v1080_v26  ;;  %v1124_v26 = vpack.c.bf16 %v952_v18, %v948_v17  ;;  %v962_v33 = vld [vmem:[%s1749_s0 + $0x470] sm:$0xff]  ;;  %v969_v35 = vld [vmem:[%s1749_s0 + $0x4a8] sm:$0xff]  ;;  %v967_v36 = vld [vmem:[%s1749_s0 + $0x498] sm:$0xff] }
  0x33   :  { %1103 = vmatpush1.bf16.msra.mxu1 %v1102_v27  ;;  %1083 = vmatprep.subr.bf16.mxu0 %v1082_v28  ;;  %v1146_v27 = vpack.c.bf16 %v954_v21, %v950_v19  ;;  %v1126_v28 = vpack.c.bf16 %v961_v23, %v957_v22  ;;  %v971_v37 = vld [vmem:[%s1749_s0 + $0x4b8] sm:$0xff]  ;;  %v964_v41 = vld [vmem:[%s1749_s0 + $0x480] sm:$0xff]  ;;  %v966_v43 = vld [vmem:[%s1749_s0 + $0x490] sm:$0xff] }
  0x34   :  { %1105 = vmatprep.subr.bf16.mxu1 %v1104_v32  ;;  %v1148_v32 = vpack.c.bf16 %v963_v25, %v959_v24  ;;  %v968_v42 = vld [vmem:[%s1749_s0 + $0x4a0] sm:$0xff]  ;;  %v973_v45 = vld [vmem:[%s1749_s0 + $0x4c8] sm:$0xff]  ;;  %v975_v47 = vld [vmem:[%s1749_s0 + $0x4d8] sm:$0xff] }
  0x35   :  { %v977_v46 = vld [vmem:[%s1749_s0 + $0x4e8] sm:$0x7]  ;;  %v979_v48 = vld [vmem:[%s1749_s0 + $0x4f8] sm:$0x7]  ;;  %v1132_v49 = vpack.c.bf16 %v968_v42, %v964_v41  ;;  %v974_v56 = vld [vmem:[%s1749_s0 + $0x4d0] sm:$0xff] }
  0x36   :  { %1085 = vmatpush1.bf16.msra.mxu0 %v1084_v38  ;;  %v1128_v38 = vpack.c.bf16 %v960_v30, %v956_v29  ;;  %v1134_v51 = vpack.c.bf16 %v977_v46, %v973_v45  ;;  %v1156_v55 = vpack.c.bf16 %v979_v48, %v975_v47  ;;  %v978_v57 = vld [vmem:[%s1749_s0 + $0x4f0] sm:$0x7] }
  0x37   :  { %1107 = vmatpush1.bf16.msra.mxu1 %v1106_v39  ;;  %1087 = vmatprep.subr.bf16.mxu0 %v1086_v40  ;;  %v1150_v39 = vpack.c.bf16 %v962_v33, %v958_v31  ;;  %v1130_v40 = vpack.c.bf16 %v969_v35, %v965_v34  ;;  %v1159_v59 = vpack.c.bf16 %v978_v57, %v974_v56 }
  0x38   :  { %1109 = vmatprep.subr.bf16.mxu1 %v1108_v44  ;;  %v970_v44 = vld [vmem:[%s1749_s0 + $0x4b0] sm:$0xff] }
  0x3a   :  { %1089 = vmatpush1.bf16.msra.mxu0 %v1088_v50  ;;  %v1154_v50 = vpack.c.bf16 %v970_v44, %v966_v43 }
  0x3b   :  { %1111 = vmatpush1.bf16.msra.mxu1 %v1110_v53  ;;  %1092 = vmatprep.subr.msk.bf16.mxu0 %vm1296_vm2, %v1090_v54  ;;  %v972_v53 = vld [vmem:[%s1749_s0 + $0x4c0] sm:$0xff] }
  0x3c   :  { %1114 = vmatprep.subr.msk.bf16.mxu1 %vm1296_vm2, %v1112_v58  ;;  %v976_v54 = vld [vmem:[%s1749_s0 + $0x4e0] sm:$0x7] }
  0x3d   :  { %v1137_v58 = vpack.c.bf16 %v976_v54, %v972_v53 }
  0x3e   :  { %1095 = vmatpush1.bf16.msk.msra.mxu0 %vm1296_vm2, %v1093_v0 }
  0x3f   :  { %1117 = vmatpush1.bf16.msk.msra.mxu1 %vm1296_vm2, %v1115_v1  ;;  %1119 = vmatprep.subr.bf16.mxu0 %v1118_v2 }
  0x40   :  { %1141 = vmatprep.subr.bf16.mxu1 %v1140_v7 }
  0x41   :  { %936 = vmatmul.mubr.msk.f32.vlgmr.msra.gmra.mrb[4].mxu0 %vm61_vm3, %v1360_v14 }
  0x42   :  { %939 = vmatmul.mubr.msk.f32.vlgmr.msra.gmra.mrb[4].mxu1 %vm61_vm3, %v1360_v14  ;;  %1121 = vmatpush1.bf16.msra.mxu0 %v1120_v13 }
  0x43   :  { %1143 = vmatpush1.bf16.msra.mxu1 %v1142_v15  ;;  %1123 = vmatprep.subr.bf16.mxu0 %v1122_v16 }
  0x44   :  { %1145 = vmatprep.subr.bf16.mxu1 %v1144_v20  ;;  %747 = vmatprep.mubr.f32.mxu0 %v1166_v3 }
  0x45   :  { %818 = vmatprep.mubr.f32.mxu1 %v1166_v3  ;;  %v1152_v3 = vpack.c.bf16 %v971_v37, %v967_v36 }
  0x46   :  { %1125 = vmatpush1.bf16.msra.mxu0 %v1124_v26 }
  0x47   :  { %1147 = vmatpush1.bf16.msra.mxu1 %v1146_v27  ;;  %1127 = vmatprep.subr.bf16.mxu0 %v1126_v28 }
  0x48   :  { %1149 = vmatprep.subr.bf16.mxu1 %v1148_v32 }
  0x4a   :  { %1129 = vmatpush1.bf16.msra.mxu0 %v1128_v38 }
  0x4b   :  { %1151 = vmatpush1.bf16.msra.mxu1 %v1150_v39  ;;  %1131 = vmatprep.subr.bf16.mxu0 %v1130_v40 }
  0x4c   :  { %1153 = vmatprep.subr.bf16.mxu1 %v1152_v3 }
  0x4e   :  { %1133 = vmatpush1.bf16.msra.mxu0 %v1132_v49 }
  0x4f   :  { %1155 = vmatpush1.bf16.msra.mxu1 %v1154_v50  ;;  %1136 = vmatprep.subr.msk.bf16.mxu0 %vm1296_vm2, %v1134_v51 }
  0x50   :  { %1158 = vmatprep.subr.msk.bf16.mxu1 %vm1296_vm2, %v1156_v55 }
  0x52   :  { %1139 = vmatpush1.bf16.msk.msra.mxu0 %vm1296_vm2, %v1137_v58 }
  0x53   :  { %1161 = vmatpush1.bf16.msk.msra.mxu1 %vm1296_vm2, %v1159_v59 }
  0x55   :  { %982 = vmatmul.mubr.msk.f32.vlgmr.msra.gmra.mrb[6].mxu0 %vm61_vm3, %v1360_v14 }
  0x56   :  { %985 = vmatmul.mubr.msk.f32.vlgmr.msra.gmra.mrb[6].mxu1 %vm61_vm3, %v1360_v14 }
  0xa9   :  { %v59_v0 = vpop.permute.xlu0 %58 }
  0xec   :  { %v144_v60 = vpop.f32.mrb[0].mxu0 }
  0xed   :  { %v215_v61 = vpop.f32.mrb[0].mxu1  ;;  %v146_v62 = vpop.f32.mrb[1].mxu0  ;;  %v145_v1 = vadd.f32 %v144_v60, %v59_v0 }
  0xee   :  { %v217_v63 = vpop.f32.mrb[1].mxu1  ;;  %v147_v2 = vadd.f32 %v146_v62, %v59_v0  ;;  %v216_v5 = vadd.f32 %v215_v61, %v59_v0 }
  0xef   :  { %v218_v6 = vadd.f32 %v217_v63, %v59_v0  ;;  %v220_v12 = vmax.f32 %v145_v1, 0.0 }
  0xf0   :  { %v221_v14 = vmax.f32 %v147_v2, 0.0  ;;  %v222_v16 = vmax.f32 %v216_v5, 0.0 }
  0xf1   :  { %v223_v19 = vmax.f32 %v218_v6, 0.0 }
 0x100   :  { %v343_v4 = vpop.f32.mrb[2].mxu0 }
 0x101   :  { %v344_v7 = vadd.f32 %v343_v4, %v59_v0  ;;  %v414_v8 = vpop.f32.mrb[2].mxu1  ;;  %v345_v52 = vpop.f32.mrb[3].mxu0 }
 0x102   :  { %v415_v9 = vadd.f32 %v414_v8, %v59_v0  ;;  %v346_v10 = vadd.f32 %v345_v52, %v59_v0  ;;  %v416_v11 = vpop.f32.mrb[3].mxu1 }
 0x103   :  { %v419_v13 = vmax.f32 %v344_v7, 0.0  ;;  %v417_v15 = vadd.f32 %v416_v11, %v59_v0 }
 0x104   :  { %v421_v17 = vmax.f32 %v415_v9, 0.0  ;;  %v420_v18 = vmax.f32 %v346_v10, 0.0 }
 0x105   :  { %v423_v20 = vmax.f32 %v220_v12, %v419_v13  ;;  %v422_v21 = vmax.f32 %v417_v15, 0.0 }
 0x106   :  { %v425_v22 = vmax.f32 %v222_v16, %v421_v17  ;;  %v424_v23 = vmax.f32 %v221_v14, %v420_v18 }
 0x107   :  { %v426_v24 = vmax.f32 %v223_v19, %v422_v21 }
 0x114   :  { %v546_v25 = vpop.f32.mrb[4].mxu0 }
 0x115   :  { %v547_v26 = vadd.f32 %v546_v25, %v59_v0  ;;  %v617_v27 = vpop.f32.mrb[4].mxu1  ;;  %v548_v28 = vpop.f32.mrb[5].mxu0 }
 0x116   :  { %v618_v29 = vadd.f32 %v617_v27, %v59_v0  ;;  %v549_v30 = vadd.f32 %v548_v28, %v59_v0  ;;  %v619_v31 = vpop.f32.mrb[5].mxu1 }
 0x117   :  { %v622_v32 = vmax.f32 %v547_v26, 0.0  ;;  %v620_v33 = vadd.f32 %v619_v31, %v59_v0 }
 0x118   :  { %v624_v34 = vmax.f32 %v618_v29, 0.0  ;;  %v623_v35 = vmax.f32 %v549_v30, 0.0 }
 0x119   :  { %v626_v36 = vmax.f32 %v423_v20, %v622_v32  ;;  %v625_v37 = vmax.f32 %v620_v33, 0.0 }
 0x11a   :  { %v628_v38 = vmax.f32 %v425_v22, %v624_v34  ;;  %v627_v39 = vmax.f32 %v424_v23, %v623_v35 }
 0x11b   :  { %v629_v40 = vmax.f32 %v426_v24, %v625_v37 }
 0x128   :  { %v749_v41 = vpop.f32.mrb[6].mxu0 }
 0x129   :  { %v750_v42 = vadd.f32 %v749_v41, %v59_v0  ;;  %v820_v43 = vpop.f32.mrb[6].mxu1  ;;  %v751_v3 = vpop.f32.mrb[7].mxu0 }
 0x12a   :  { %v821_v44 = vadd.f32 %v820_v43, %v59_v0  ;;  %v752_v45 = vadd.f32 %v751_v3, %v59_v0  ;;  %v822_v46 = vpop.f32.mrb[7].mxu1 }
 0x12b   :  { %v825_v47 = vmax.f32 %v750_v42, 0.0  ;;  %v823_v48 = vadd.f32 %v822_v46, %v59_v0 }
 0x12c   :  { %v827_v49 = vmax.f32 %v821_v44, 0.0  ;;  %v826_v50 = vmax.f32 %v752_v45, 0.0 }
 0x12d   :  { %v829_v51 = vmax.f32 %v626_v36, %v825_v47  ;;  %v828_v53 = vmax.f32 %v823_v48, 0.0 }
 0x12e   :  { %v831_v54 = vmax.f32 %v628_v38, %v827_v49  ;;  %v830_v55 = vmax.f32 %v627_v39, %v826_v50 }
 0x12f   :  { %833 = vst [vmem:[%s1752_s3] sm:$0x3f] %v829_v51  ;;  %v832_v56 = vmax.f32 %v629_v40, %v828_v53 }
 0x130   :  { %835 = vst [vmem:[%s1752_s3 + $0x10] sm:$0x3f] %v831_v54  ;;  %834 = vst [vmem:[%s1752_s3 + $0x8] sm:$0x3f] %v830_v55 }
 0x131   :  { %837 = vst.msk [vmem:[%s1752_s3 + $0x18] sm:$0x3f] %vm836_vm4, %v832_v56 }

// kernel: cifarnet_forward.4
= control target key start
LH: loop header
LB: loop body
LE: loop exit
PB: predicated region body
PF: predicated region fallthrough
CT: control target
= control target key end

     0   :  { %v631_v0 = vmov 0.0|0.0   ;;  %v632_v8 = vmov 0   ;;  %vm49_vm0 = vcmask 179200   ;;  %v633_v61 = vmov 0.0   ;;  %s982_s0 = inlined_call_operand.vmem [shape: f32[4,150,50], index: 0, kind: input, shape index: {}]   ;;  %s983_s1 = inlined_call_operand.vmem [shape: f32[16,150], index: 1, kind: input, shape index: {}]   ;;  %s984_s2 = inlined_call_operand.vmem [shape: f32[16,1], index: 2, kind: input, shape index: {}]   ;;  %s985_s3 = inlined_call_operand.vmem [shape: f32[16,50], index: 3, kind: output, shape index: {}]  }
   0x1   :  { %519 = vmatprep.subr.bf16.mxu0 %v631_v0  ;;  %546 = vmatprep.subr.bf16.mxu1 %v631_v0  ;;  %v20_v1 = vld [vmem:[%s982_s0] sm:$0xff]  ;;  %v21_v2 = vld [vmem:[%s982_s0 + $0x8] sm:$0xff]  ;;  %v453_v3 = vld [vmem:[%s982_s0 + $0x98] sm:$0xff]  ;;  %vm56_vm1 = vcmask 1045504   ;;  %vm443_vm2 = vcmask 408576  }
   0x2   :  { %v520_v4 = vpack.c.bf16 %v21_v2, %v20_v1  ;;  %v454_v5 = vld [vmem:[%s982_s0 + $0xa0] sm:$0xff]  ;;  %v22_v6 = vld [vmem:[%s982_s0 + $0x10] sm:$0xff]  ;;  %v23_v7 = vld [vmem:[%s982_s0 + $0x18] sm:$0xff]  ;;  %630 = vset.pattern.permute.xlu0 %v632_v8 }
   0x3   :  { %v547_v9 = vpack.c.bf16 %v454_v5, %v453_v3  ;;  %v455_v10 = vld [vmem:[%s982_s0 + $0xa8] sm:$0xff]  ;;  %v456_v11 = vld [vmem:[%s982_s0 + $0xb0] sm:$0xff]  ;;  %v523_v12 = vpack.c.bf16 %v23_v7, %v22_v6  ;;  %v24_v14 = vld [vmem:[%s982_s0 + $0x20] sm:$0xff] }
   0x4   :  { %521 = vmatpush1.bf16.msra.mxu0 %v520_v4  ;;  %v550_v13 = vpack.c.bf16 %v456_v11, %v455_v10  ;;  %v25_v15 = vld [vmem:[%s982_s0 + $0x28] sm:$0xff]  ;;  %v457_v16 = vld [vmem:[%s982_s0 + $0xb8] sm:$0xff]  ;;  %v458_v17 = vld [vmem:[%s982_s0 + $0xc0] sm:$0xff] }
   0x5   :  { %548 = vmatpush1.bf16.msra.mxu1 %v547_v9  ;;  %522 = vmatprep.subr.bf16.mxu0 %v631_v0  ;;  %v526_v18 = vpack.c.bf16 %v25_v15, %v24_v14  ;;  %v553_v19 = vpack.c.bf16 %v458_v17, %v457_v16  ;;  %v26_v20 = vld [vmem:[%s982_s0 + $0x30] sm:$0xff]  ;;  %v27_v21 = vld [vmem:[%s982_s0 + $0x38] sm:$0xff]  ;;  %v459_v22 = vld [vmem:[%s982_s0 + $0xc8] sm:$0xff] }
   0x6   :  { %549 = vmatprep.subr.bf16.mxu1 %v631_v0  ;;  %v460_v23 = vld [vmem:[%s982_s0 + $0xd0] sm:$0xff]  ;;  %v529_v24 = vpack.c.bf16 %v27_v21, %v26_v20  ;;  %v28_v26 = vld [vmem:[%s982_s0 + $0x40] sm:$0xff]  ;;  %v29_v27 = vld [vmem:[%s982_s0 + $0x48] sm:$0xff] }
   0x7   :  { %v556_v25 = vpack.c.bf16 %v460_v23, %v459_v22  ;;  %v718_v28 = vld [vmem:[%s983_s1 + $0x8] sm:$0xff]  ;;  %v461_v29 = vld [vmem:[%s982_s0 + $0xd8] sm:$0xff]  ;;  %v462_v30 = vld [vmem:[%s982_s0 + $0xe0] sm:$0xff]  ;;  %v532_v31 = vpack.c.bf16 %v29_v27, %v28_v26 }
   0x8   :  { %524 = vmatpush1.bf16.msra.mxu0 %v523_v12  ;;  %451 = vmatprep.mubr.msk.f32.mxu0 %vm49_vm0, %v718_v28  ;;  %v559_v32 = vpack.c.bf16 %v462_v30, %v461_v29  ;;  %v30_v33 = vld [vmem:[%s982_s0 + $0x50] sm:$0xff]  ;;  %v31_v34 = vld [vmem:[%s982_s0 + $0x58] sm:$0xff]  ;;  %v463_v35 = vld [vmem:[%s982_s0 + $0xe8] sm:$0xff] }
   0x9   :  { %551 = vmatpush1.bf16.msra.mxu1 %v550_v13  ;;  %525 = vmatprep.subr.bf16.mxu0 %v631_v0  ;;  %v464_v36 = vld [vmem:[%s982_s0 + $0xf0] sm:$0xff]  ;;  %v535_v37 = vpack.c.bf16 %v31_v34, %v30_v33  ;;  %v32_v39 = vld [vmem:[%s982_s0 + $0x60] sm:$0xff]  ;;  %v33_v40 = vld [vmem:[%s982_s0 + $0x68] sm:$0xff] }
   0xa   :  { %552 = vmatprep.subr.bf16.mxu1 %v631_v0  ;;  %473 = vmatprep.mubr.msk.f32.mxu1 %vm49_vm0, %v718_v28  ;;  %v562_v38 = vpack.c.bf16 %v464_v36, %v463_v35  ;;  %v465_v41 = vld [vmem:[%s982_s0 + $0xf8] sm:$0xff]  ;;  %v466_v42 = vld [vmem:[%s982_s0 + $0x100] sm:$0xff]  ;;  %v538_v43 = vpack.c.bf16 %v33_v40, %v32_v39  ;;  %v34_v45 = vld [vmem:[%s982_s0 + $0x70] sm:$0xff] }
   0xb   :  { %v565_v44 = vpack.c.bf16 %v466_v42, %v465_v41  ;;  %v35_v46 = vld [vmem:[%s982_s0 + $0x78] sm:$0xff]  ;;  %v467_v47 = vld [vmem:[%s982_s0 + $0x108] sm:$0xff]  ;;  %v468_v48 = vld [vmem:[%s982_s0 + $0x110] sm:$0xff] }
   0xc   :  { %527 = vmatpush1.bf16.msra.mxu0 %v526_v18  ;;  %v18_v49 = vld [vmem:[%s984_s2] sm:$0xff]  ;;  %v541_v50 = vpack.c.bf16 %v35_v46, %v34_v45  ;;  %v568_v51 = vpack.c.bf16 %v468_v48, %v467_v47  ;;  %v37_v53 = vld [vmem:[%s982_s0 + $0x88] sm:$0xff]  ;;  %v469_v55 = vld [vmem:[%s982_s0 + $0x118] sm:$0xff] }
   0xd   :  { %554 = vmatpush1.bf16.msra.mxu1 %v553_v19  ;;  %528 = vmatprep.subr.bf16.mxu0 %v631_v0  ;;  %v36_v52 = vld [vmem:[%s982_s0 + $0x80] sm:$0xff]  ;;  %v19_v54 = vld [vmem:[%s984_s2 + $0x8] sm:$0xff]  ;;  %v475_v59 = vld [vmem:[%s982_s0 + $0x130] sm:$0xff] }
   0xe   :  { %555 = vmatprep.subr.bf16.mxu1 %v631_v0  ;;  %41 = vperm.xlu0 %630, %v18_v49   ;;  %v470_v56 = vld [vmem:[%s982_s0 + $0x120] sm:$0xff]  ;;  %v544_v57 = vpack.c.bf16 %v37_v53, %v36_v52  ;;  %v476_v60 = vld [vmem:[%s982_s0 + $0x138] sm:$0xff]  ;;  %v38_v62 = vld [vmem:[%s982_s0 + $0x90] sm:$0x3f] }
   0xf   :  { %v571_v58 = vpack.c.bf16 %v470_v56, %v469_v55  ;;  %v497_v63 = vld [vmem:[%s982_s0 + $0x1c8] sm:$0xff]  ;;  %v498_v1 = vld [vmem:[%s982_s0 + $0x1d0] sm:$0xff]  ;;  %v818_v3 = vld [vmem:[%s983_s1] sm:$0xff]  ;;  %v574_v4 = vpack.c.bf16 %v476_v60, %v475_v59 }
  0x10   :  { %530 = vmatpush1.bf16.msra.mxu0 %v529_v24  ;;  %v471_v2 = vld [vmem:[%s982_s0 + $0x128] sm:$0x3f]  ;;  %v601_v5 = vpack.c.bf16 %v498_v1, %v497_v63  ;;  %v477_v6 = vld [vmem:[%s982_s0 + $0x140] sm:$0xff]  ;;  %v499_v8 = vld [vmem:[%s982_s0 + $0x1d8] sm:$0xff] }
  0x11   :  { %557 = vmatpush1.bf16.msra.mxu1 %v556_v25  ;;  %531 = vmatprep.subr.bf16.mxu0 %v631_v0  ;;  %v478_v7 = vld [vmem:[%s982_s0 + $0x148] sm:$0xff]  ;;  %v500_v9 = vld [vmem:[%s982_s0 + $0x1e0] sm:$0xff]  ;;  %v840_v10 = vld [vmem:[%s983_s1 + $0x18] sm:$0xff] }
  0x12   :  { %558 = vmatprep.subr.bf16.mxu1 %v631_v0  ;;  %46 = vperm.xlu0 %630, %v19_v54   ;;  %v577_v11 = vpack.c.bf16 %v478_v7, %v477_v6  ;;  %v846_v12 = vld [vmem:[%s983_s1 + $0x10] sm:$0xff]  ;;  %v604_v13 = vpack.c.bf16 %v500_v9, %v499_v8  ;;  %v480_v15 = vld [vmem:[%s982_s0 + $0x158] sm:$0xff]  ;;  %v501_v16 = vld [vmem:[%s982_s0 + $0x1e8] sm:$0xff] }
  0x13   :  { %v479_v14 = vld [vmem:[%s982_s0 + $0x150] sm:$0xff]  ;;  %v481_v20 = vld [vmem:[%s982_s0 + $0x160] sm:$0xff]  ;;  %v482_v21 = vld [vmem:[%s982_s0 + $0x168] sm:$0xff] }
  0x14   :  { %533 = vmatpush1.bf16.msra.mxu0 %v532_v31  ;;  %v502_v17 = vld [vmem:[%s982_s0 + $0x1f0] sm:$0xff]  ;;  %v580_v18 = vpack.c.bf16 %v480_v15, %v479_v14  ;;  %v503_v22 = vld [vmem:[%s982_s0 + $0x1f8] sm:$0xff]  ;;  %v504_v23 = vld [vmem:[%s982_s0 + $0x200] sm:$0xff]  ;;  %v583_v24 = vpack.c.bf16 %v482_v21, %v481_v20 }
  0x15   :  { %560 = vmatpush1.bf16.msra.mxu1 %v559_v32  ;;  %534 = vmatprep.subr.bf16.mxu0 %v631_v0  ;;  %v607_v19 = vpack.c.bf16 %v502_v17, %v501_v16  ;;  %v610_v25 = vpack.c.bf16 %v504_v23, %v503_v22  ;;  %v483_v26 = vld [vmem:[%s982_s0 + $0x170] sm:$0xff]  ;;  %v484_v27 = vld [vmem:[%s982_s0 + $0x178] sm:$0xff]  ;;  %v485_v32 = vld [vmem:[%s982_s0 + $0x180] sm:$0xff] }
  0x16   :  { %561 = vmatprep.subr.bf16.mxu1 %v631_v0  ;;  %v506_v29 = vld [vmem:[%s982_s0 + $0x210] sm:$0xff]  ;;  %v586_v30 = vpack.c.bf16 %v484_v27, %v483_v26  ;;  %v486_v33 = vld [vmem:[%s982_s0 + $0x188] sm:$0xff]  ;;  %v507_v34 = vld [vmem:[%s982_s0 + $0x218] sm:$0xff] }
  0x17   :  { %v508_v35 = vld [vmem:[%s982_s0 + $0x220] sm:$0xff]  ;;  %v589_v36 = vpack.c.bf16 %v486_v33, %v485_v32  ;;  %v488_v39 = vld [vmem:[%s982_s0 + $0x198] sm:$0xff]  ;;  %v509_v40 = vld [vmem:[%s982_s0 + $0x228] sm:$0xff] }
  0x18   :  { %536 = vmatpush1.bf16.msra.mxu0 %v535_v37  ;;  %v616_v37 = vpack.c.bf16 %v508_v35, %v507_v34  ;;  %v510_v41 = vld [vmem:[%s982_s0 + $0x230] sm:$0xff]  ;;  %v490_v45 = vld [vmem:[%s982_s0 + $0x1a8] sm:$0xff]  ;;  %v511_v46 = vld [vmem:[%s982_s0 + $0x238] sm:$0xff] }
  0x19   :  { %563 = vmatpush1.bf16.msra.mxu1 %v562_v38  ;;  %537 = vmatprep.subr.bf16.mxu0 %v631_v0  ;;  %v487_v38 = vld [vmem:[%s982_s0 + $0x190] sm:$0xff]  ;;  %v512_v47 = vld [vmem:[%s982_s0 + $0x240] sm:$0xff]  ;;  %v513_v52 = vld [vmem:[%s982_s0 + $0x248] sm:$0xff] }
  0x1a   :  { %564 = vmatprep.subr.bf16.mxu1 %v631_v0  ;;  %v592_v42 = vpack.c.bf16 %v488_v39, %v487_v38  ;;  %v622_v49 = vpack.c.bf16 %v512_v47, %v511_v46  ;;  %v514_v53 = vld [vmem:[%s982_s0 + $0x250] sm:$0xff]  ;;  %v493_v56 = vld [vmem:[%s982_s0 + $0x1c0] sm:$0x3f] }
  0x1b   :  { %v625_v55 = vpack.c.bf16 %v514_v53, %v513_v52 }
  0x1c   :  { %539 = vmatpush1.bf16.msra.mxu0 %v538_v43  ;;  %v619_v43 = vpack.c.bf16 %v510_v41, %v509_v40 }
  0x1d   :  { %566 = vmatpush1.bf16.msra.mxu1 %v565_v44  ;;  %540 = vmatprep.subr.bf16.mxu0 %v631_v0  ;;  %v489_v44 = vld [vmem:[%s982_s0 + $0x1a0] sm:$0xff] }
  0x1e   :  { %567 = vmatprep.subr.bf16.mxu1 %v631_v0  ;;  %v595_v48 = vpack.c.bf16 %v490_v45, %v489_v44 }
  0x20   :  { %542 = vmatpush1.bf16.msra.mxu0 %v541_v50  ;;  %v491_v50 = vld [vmem:[%s982_s0 + $0x1b0] sm:$0xff] }
  0x21   :  { %569 = vmatpush1.bf16.msra.mxu1 %v568_v51  ;;  %543 = vmatprep.subr.bf16.mxu0 %v631_v0  ;;  %v492_v51 = vld [vmem:[%s982_s0 + $0x1b8] sm:$0xff] }
  0x22   :  { %570 = vmatprep.subr.bf16.mxu1 %v631_v0  ;;  %v598_v54 = vpack.c.bf16 %v492_v51, %v491_v50 }
  0x24   :  { %545 = vmatpush1.bf16.msra.mxu0 %v544_v57  ;;  %v515_v57 = vld [vmem:[%s982_s0 + $0x258] sm:$0x3f] }
  0x25   :  { %572 = vmatpush1.bf16.msra.mxu1 %v571_v58  ;;  %96 = vmatprep.subr.mxu0 %v633_v61 }
  0x26   :  { %196 = vmatprep.subr.mxu1 %v633_v61 }
  0x28   :  { %450 = vmatpush1.msk.msra.mxu0 %vm56_vm1, %v38_v62 }
  0x29   :  { %472 = vmatpush1.msk.msra.mxu1 %vm56_vm1, %v471_v2  ;;  %125 = vmatmul.mubr.f32.vlgmr.msra.gmra.mrb[0].mxu0 %v818_v3 }
  0x2a   :  { %573 = vmatprep.subr.bf16.mxu0 %v631_v0  ;;  %600 = vmatprep.subr.bf16.mxu1 %v631_v0 }
  0x2b   :  { %225 = vmatmul.mubr.f32.vlgmr.msra.gmra.mrb[0].mxu1 %v818_v3  ;;  %575 = vmatpush1.bf16.msra.mxu0 %v574_v4 }
  0x2c   :  { %602 = vmatpush1.bf16.msra.mxu1 %v601_v5  ;;  %576 = vmatprep.subr.bf16.mxu0 %v631_v0 }
  0x2d   :  { %603 = vmatprep.subr.bf16.mxu1 %v631_v0  ;;  %452 = vmatprep.mubr.msk.f32.mxu0 %vm49_vm0, %v840_v10 }
  0x2e   :  { %130 = vmatmul.mubr.f32.gmra.mrb[2].mxu0 %v846_v12  ;;  %474 = vmatprep.mubr.msk.f32.mxu1 %vm49_vm0, %v840_v10 }
  0x2f   :  { %578 = vmatpush1.bf16.msra.mxu0 %v577_v11  ;;  %230 = vmatmul.mubr.f32.gmra.mrb[2].mxu1 %v846_v12 }
  0x30   :  { %605 = vmatpush1.bf16.msra.mxu1 %v604_v13  ;;  %579 = vmatprep.subr.bf16.mxu0 %v631_v0 }
  0x31   :  { %606 = vmatprep.subr.bf16.mxu1 %v631_v0  ;;  %495 = vmatprep.mubr.msk.f32.mxu0 %vm49_vm0, %v718_v28 }
  0x32   :  { %517 = vmatprep.mubr.msk.f32.mxu1 %vm49_vm0, %v718_v28  ;;  %v505_v28 = vld [vmem:[%s982_s0 + $0x208] sm:$0xff] }
  0x33   :  { %581 = vmatpush1.bf16.msra.mxu0 %v580_v18  ;;  %v613_v31 = vpack.c.bf16 %v506_v29, %v505_v28 }
  0x34   :  { %608 = vmatpush1.bf16.msra.mxu1 %v607_v19  ;;  %582 = vmatprep.subr.bf16.mxu0 %v631_v0 }
  0x35   :  { %609 = vmatprep.subr.bf16.mxu1 %v631_v0 }
  0x37   :  { %584 = vmatpush1.bf16.msra.mxu0 %v583_v24 }
  0x38   :  { %611 = vmatpush1.bf16.msra.mxu1 %v610_v25  ;;  %585 = vmatprep.subr.bf16.mxu0 %v631_v0 }
  0x39   :  { %612 = vmatprep.subr.bf16.mxu1 %v631_v0 }
  0x3b   :  { %587 = vmatpush1.bf16.msra.mxu0 %v586_v30 }
  0x3c   :  { %614 = vmatpush1.bf16.msra.mxu1 %v613_v31  ;;  %588 = vmatprep.subr.bf16.mxu0 %v631_v0 }
  0x3d   :  { %615 = vmatprep.subr.bf16.mxu1 %v631_v0 }
  0x3f   :  { %590 = vmatpush1.bf16.msra.mxu0 %v589_v36 }
  0x40   :  { %617 = vmatpush1.bf16.msra.mxu1 %v616_v37  ;;  %591 = vmatprep.subr.bf16.mxu0 %v631_v0 }
  0x41   :  { %618 = vmatprep.subr.bf16.mxu1 %v631_v0 }
  0x43   :  { %593 = vmatpush1.bf16.msra.mxu0 %v592_v42 }
  0x44   :  { %620 = vmatpush1.bf16.msra.mxu1 %v619_v43  ;;  %594 = vmatprep.subr.bf16.mxu0 %v631_v0 }
  0x45   :  { %621 = vmatprep.subr.bf16.mxu1 %v631_v0 }
  0x47   :  { %596 = vmatpush1.bf16.msra.mxu0 %v595_v48 }
  0x48   :  { %623 = vmatpush1.bf16.msra.mxu1 %v622_v49  ;;  %597 = vmatprep.subr.bf16.mxu0 %v631_v0 }
  0x49   :  { %624 = vmatprep.subr.bf16.mxu1 %v631_v0 }
  0x4b   :  { %599 = vmatpush1.bf16.msra.mxu0 %v598_v54 }
  0x4c   :  { %626 = vmatpush1.bf16.msra.mxu1 %v625_v55  ;;  %298 = vmatprep.subr.mxu0 %v633_v61 }
  0x4d   :  { %400 = vmatprep.subr.mxu1 %v633_v61 }
  0x4f   :  { %494 = vmatpush1.msk.msra.mxu0 %vm56_vm1, %v493_v56 }
  0x50   :  { %516 = vmatpush1.msk.msra.mxu1 %vm56_vm1, %v515_v57  ;;  %327 = vmatmul.mubr.f32.vlgmr.msra.gmra.mrb[4].mxu0 %v818_v3 }
  0x51   :  { %429 = vmatmul.mubr.f32.vlgmr.msra.gmra.mrb[4].mxu1 %v818_v3  ;;  %496 = vmatprep.mubr.msk.f32.mxu0 %vm49_vm0, %v840_v10 }
  0x52   :  { %518 = vmatprep.mubr.msk.f32.mxu1 %vm49_vm0, %v840_v10 }
  0x54   :  { %332 = vmatmul.mubr.f32.gmra.mrb[6].mxu0 %v846_v12 }
  0x55   :  { %434 = vmatmul.mubr.f32.gmra.mrb[6].mxu1 %v846_v12 }
  0x8d   :  { %v42_v0 = vpop.permute.xlu0 %41 }
  0x91   :  { %v47_v2 = vpop.permute.xlu0 %46 }
  0xfc   :  { %v126_v58 = vpop.f32.mrb[0].mxu0 }
  0xfd   :  { %v128_v59 = vpop.f32.mrb[1].mxu0  ;;  %v127_v60 = vadd.f32 %v126_v58, %v42_v0 }
  0xfe   :  { %v226_v61 = vpop.f32.mrb[0].mxu1 }
  0xff   :  { %v135_v62 = vmax.f32 %v127_v60, 0.0  ;;  %v227_v63 = vadd.f32 %v226_v61, %v42_v0  ;;  %v228_v1 = vpop.f32.mrb[1].mxu1 }
 0x101   :  { %v235_v3 = vmax.f32 %v227_v63, 0.0  ;;  %v131_v4 = vpop.f32.mrb[2].mxu0 }
 0x102   :  { %v132_v5 = vadd.f32 %v131_v4, %v47_v2  ;;  %v133_v6 = vpop.f32.mrb[3].mxu0  ;;  %v231_v7 = vpop.f32.mrb[2].mxu1 }
 0x103   :  { %v237_v8 = vmax.f32 %v135_v62, %v235_v3  ;;  %v232_v9 = vadd.f32 %v231_v7, %v47_v2  ;;  %v233_v10 = vpop.f32.mrb[3].mxu1 }
 0x104   :  { %v136_v11 = vmax.f32 %v132_v5, 0.0 }
 0x105   :  { %v236_v13 = vmax.f32 %v232_v9, 0.0 }
 0x107   :  { %v238_v12 = vmax.f32 %v136_v11, %v236_v13 }
 0x123   :  { %v328_v14 = vpop.f32.mrb[4].mxu0 }
 0x124   :  { %v329_v15 = vadd.f32 %v328_v14, %v42_v0  ;;  %v430_v16 = vpop.f32.mrb[4].mxu1  ;;  %v330_v17 = vpop.f32.mrb[5].mxu0 }
 0x125   :  { %v431_v18 = vadd.f32 %v430_v16, %v42_v0  ;;  %v432_v19 = vpop.f32.mrb[5].mxu1 }
 0x126   :  { %v337_v20 = vmax.f32 %v329_v15, 0.0 }
 0x127   :  { %v333_v21 = vpop.f32.mrb[6].mxu0  ;;  %v439_v23 = vmax.f32 %v431_v18, 0.0 }
 0x128   :  { %v339_v22 = vmax.f32 %v237_v8, %v337_v20  ;;  %v334_v24 = vadd.f32 %v333_v21, %v47_v2  ;;  %v435_v25 = vpop.f32.mrb[6].mxu1  ;;  %v335_v26 = vpop.f32.mrb[7].mxu0 }
 0x129   :  { %v436_v27 = vadd.f32 %v435_v25, %v47_v2  ;;  %v437_v28 = vpop.f32.mrb[7].mxu1 }
 0x12a   :  { %v441_v29 = vmax.f32 %v339_v22, %v439_v23  ;;  %v338_v30 = vmax.f32 %v334_v24, 0.0 }
 0x12b   :  { %v440_v32 = vmax.f32 %v436_v27, 0.0 }
 0x12c   :  { %444 = vst.msk [vmem:[%s985_s3] sm:$0xff] %vm443_vm2, %v441_v29  ;;  %v340_v31 = vmax.f32 %v238_v12, %v338_v30 }
 0x12e   :  { %v442_v33 = vmax.f32 %v340_v31, %v440_v32 }
 0x130   :  { %445 = vst.msk [vmem:[%s985_s3 + $0x8] sm:$0xff] %vm443_vm2, %v442_v33 }

// kernel: cifarnet_forward.5
= control target key start
LH: loop header
LB: loop body
LE: loop exit
PB: predicated region body
PF: predicated region fallthrough
CT: control target
= control target key end

     0   :  { %v712_v4 = vmov 0.0|0.0   ;;  %v713_v26 = vmov 1983009808   ;;  %v90_v28 = vlaneseq  ;;  %vm106_vm0 = vcmask 130048   ;;  %s1030_s0 = inlined_call_operand.vmem [shape: f32[2,400], index: 0, kind: input, shape index: {}]   ;;  %s1031_s1 = inlined_call_operand.vmem [shape: f32[400,120], index: 1, kind: input, shape index: {}]   ;;  %s1032_s2 = inlined_call_operand.vmem [shape: f32[1,120], index: 2, kind: input, shape index: {}]   ;;  %s1033_s3 = inlined_call_operand.vmem [shape: f32[120,84], index: 3, kind: input, shape index: {}]   ;;  %s1034_s4 = inlined_call_operand.vmem [shape: f32[1,84], index: 4, kind: input, shape index: {}]   ;;  %s1035_s5 = inlined_call_operand.vmem [shape: f32[84,10], index: 5, kind: input, shape index: {}]   ;;  %s1036_s6 = inlined_call_operand.vmem [shape: f32[1,10], index: 6, kind: input, shape index: {}]   ;;  %s1037_s7 = inlined_call_operand.hbm [shape: f32[2,10], index: 7, kind: output, shape index: {}]  }
   0x1   :  { %v44_v0 = vld [vmem:[%s1031_s1 + $0x80] sm:$0xff]  ;;  %v45_v1 = vld [vmem:[%s1031_s1 + $0x88] sm:$0xff]  ;;  %619 = vmatprep.subr.bf16.mxu1 %v712_v4  ;;  %v46_v10 = vld [vmem:[%s1031_s1 + $0x90] sm:$0xff]  ;;  %v88_v27 = vunpack.c.l.s4 %v713_v26 }
   0x2   :  { %v28_v2 = vld [vmem:[%s1031_s1] sm:$0xff]  ;;  %v587_v3 = vpack.c.bf16 %v45_v1, %v44_v0  ;;  %v29_v5 = vld [vmem:[%s1031_s1 + $0x8] sm:$0xff]  ;;  %v47_v11 = vld [vmem:[%s1031_s1 + $0x98] sm:$0xff]  ;;  %v91_v39 = vshrl.u32 %v90_v28, 7 }
   0x3   :  { %v60_v6 = vld [vmem:[%s1031_s1 + $0x100] sm:$0xff]  ;;  %v61_v7 = vld [vmem:[%s1031_s1 + $0x108] sm:$0xff]  ;;  %v589_v8 = vpack.c.bf16 %v29_v5, %v28_v2  ;;  %v30_v12 = vld [vmem:[%s1031_s1 + $0x10] sm:$0xff]  ;;  %v591_v13 = vpack.c.bf16 %v47_v11, %v46_v10  ;;  %v89_v38 = vunpack.c.0.s8 %v88_v27 }
   0x4   :  { %v620_v9 = vpack.c.bf16 %v61_v7, %v60_v6  ;;  %588 = vmatprep.subr.bf16.mxu0 %v587_v3  ;;  %v31_v14 = vld [vmem:[%s1031_s1 + $0x18] sm:$0xff]  ;;  %v62_v15 = vld [vmem:[%s1031_s1 + $0x110] sm:$0xff]  ;;  %v48_v19 = vld [vmem:[%s1031_s1 + $0xa0] sm:$0xff] }
   0x5   :  { %v63_v16 = vld [vmem:[%s1031_s1 + $0x118] sm:$0xff]  ;;  %590 = vmatpush3.bf16.msra.mxu0 %v589_v8  ;;  %v593_v17 = vpack.c.bf16 %v31_v14, %v30_v12  ;;  %v49_v20 = vld [vmem:[%s1031_s1 + $0xa8] sm:$0xff]  ;;  %v32_v21 = vld [vmem:[%s1031_s1 + $0x20] sm:$0xff]  ;;  %v92_v49 = vsub.s32 %v89_v38, %v91_v39 }
   0x6   :  { %621 = vmatpush1.bf16.msra.mxu1 %v620_v9  ;;  %v623_v18 = vpack.c.bf16 %v63_v16, %v62_v15  ;;  %592 = vmatprep.subr.bf16.mxu0 %v591_v13  ;;  %v595_v22 = vpack.c.bf16 %v49_v20, %v48_v19  ;;  %v33_v23 = vld [vmem:[%s1031_s1 + $0x28] sm:$0xff]  ;;  %v64_v24 = vld [vmem:[%s1031_s1 + $0x120] sm:$0xff]  ;;  %v50_v29 = vld [vmem:[%s1031_s1 + $0xb0] sm:$0xff] }
   0x7   :  { %622 = vmatprep.subr.bf16.mxu1 %v712_v4  ;;  %v65_v25 = vld [vmem:[%s1031_s1 + $0x128] sm:$0xff]  ;;  %v51_v30 = vld [vmem:[%s1031_s1 + $0xb8] sm:$0xff]  ;;  %v597_v31 = vpack.c.bf16 %v33_v23, %v32_v21  ;;  %v34_v33 = vld [vmem:[%s1031_s1 + $0x30] sm:$0xff] }
   0x8   :  { %v626_v32 = vpack.c.bf16 %v65_v25, %v64_v24  ;;  %v599_v34 = vpack.c.bf16 %v51_v30, %v50_v29  ;;  %v35_v35 = vld [vmem:[%s1031_s1 + $0x38] sm:$0xff]  ;;  %v66_v36 = vld [vmem:[%s1031_s1 + $0x130] sm:$0xff]  ;;  %v52_v40 = vld [vmem:[%s1031_s1 + $0xc0] sm:$0xff] }
   0x9   :  { %594 = vmatpush3.bf16.msra.mxu0 %v593_v17  ;;  %v67_v37 = vld [vmem:[%s1031_s1 + $0x138] sm:$0xff]  ;;  %v53_v41 = vld [vmem:[%s1031_s1 + $0xc8] sm:$0xff]  ;;  %v601_v42 = vpack.c.bf16 %v35_v35, %v34_v33  ;;  %v36_v44 = vld [vmem:[%s1031_s1 + $0x40] sm:$0xff] }
   0xa   :  { %624 = vmatpush1.bf16.msra.mxu1 %v623_v18  ;;  %596 = vmatprep.subr.bf16.mxu0 %v595_v22  ;;  %v629_v43 = vpack.c.bf16 %v67_v37, %v66_v36  ;;  %v603_v45 = vpack.c.bf16 %v53_v41, %v52_v40  ;;  %v37_v46 = vld [vmem:[%s1031_s1 + $0x48] sm:$0xff]  ;;  %v68_v47 = vld [vmem:[%s1031_s1 + $0x140] sm:$0xff]  ;;  %v54_v50 = vld [vmem:[%s1031_s1 + $0xd0] sm:$0xff] }
   0xb   :  { %625 = vmatprep.subr.bf16.mxu1 %v712_v4  ;;  %v69_v48 = vld [vmem:[%s1031_s1 + $0x148] sm:$0xff]  ;;  %v55_v51 = vld [vmem:[%s1031_s1 + $0xd8] sm:$0xff]  ;;  %v605_v52 = vpack.c.bf16 %v37_v46, %v36_v44  ;;  %v38_v54 = vld [vmem:[%s1031_s1 + $0x50] sm:$0xff] }
   0xc   :  { %v632_v53 = vpack.c.bf16 %v69_v48, %v68_v47  ;;  %v27_v55 = vld [vmem:[%s1030_s0] sm:$0xff]  ;;  %v607_v56 = vpack.c.bf16 %v55_v51, %v54_v50  ;;  %v39_v57 = vld [vmem:[%s1031_s1 + $0x58] sm:$0xff]  ;;  %v70_v58 = vld [vmem:[%s1031_s1 + $0x150] sm:$0xff] }
   0xd   :  { %598 = vmatpush3.bf16.msra.mxu0 %v597_v31  ;;  %v71_v59 = vld [vmem:[%s1031_s1 + $0x158] sm:$0xff]  ;;  %v86_v60 = vcombine.high %v27_v55, %v27_v55  ;;  %v93_v61 = vrot.slane %v27_v55, %v92_v49  ;;  %v56_v62 = vld [vmem:[%s1031_s1 + $0xe0] sm:$0xff]  ;;  %v57_v63 = vld [vmem:[%s1031_s1 + $0xe8] sm:$0xff]  ;;  %v609_v2 = vpack.c.bf16 %v39_v57, %v38_v54 }
   0xe   :  { %627 = vmatpush1.bf16.msra.mxu1 %v626_v32  ;;  %600 = vmatprep.subr.bf16.mxu0 %v599_v34  ;;  %v635_v3 = vpack.c.bf16 %v71_v59, %v70_v58  ;;  %v40_v5 = vld [vmem:[%s1031_s1 + $0x60] sm:$0xff] }
   0xf   :  { %628 = vmatprep.subr.bf16.mxu1 %v712_v4  ;;  %v101_v0 = vcombine.high %v93_v61, %v93_v61  ;;  %v100_v1 = vrot.slane %v86_v60, %v92_v49 }
  0x11   :  { %602 = vmatpush3.bf16.msra.mxu0 %v601_v42 }
  0x12   :  { %630 = vmatpush1.bf16.msra.mxu1 %v629_v43  ;;  %604 = vmatprep.subr.bf16.mxu0 %v603_v45 }
  0x13   :  { %631 = vmatprep.subr.bf16.mxu1 %v712_v4 }
  0x15   :  { %606 = vmatpush3.bf16.msra.mxu0 %v605_v52 }
  0x16   :  { %633 = vmatpush1.bf16.msra.mxu1 %v632_v53 }
  0x17   :  { %12 = vsyncpa [#allocation3], 0  ;;  %608 = vmatprep.subr.bf16.mxu0 %v607_v56  ;;  %634 = vmatprep.subr.bf16.mxu1 %v712_v4  ;;  %v611_v6 = vpack.c.bf16 %v57_v63, %v56_v62  ;;  %v41_v7 = vld [vmem:[%s1031_s1 + $0x68] sm:$0xff]  ;;  %v72_v8 = vld [vmem:[%s1031_s1 + $0x160] sm:$0xff]  ;;  %v102_v10 = vcombine.high %v100_v1, %v100_v1  ;;  %v714_v46 = vmov 0.0   ;;  %vm715_vm1 = vmmov 0  }
  0x18   :  { %v73_v9 = vld [vmem:[%s1031_s1 + $0x168] sm:$0xff]  ;;  %v58_v11 = vld [vmem:[%s1031_s1 + $0xf0] sm:$0xff]  ;;  %v59_v12 = vld [vmem:[%s1031_s1 + $0xf8] sm:$0xff]  ;;  %173 = vmatprep.mubr.f32.mxu0 %v101_v0  ;;  %v613_v13 = vpack.c.bf16 %v41_v7, %v40_v5  ;;  %vm272_vm2 = vcmask 982016   ;;  %vm369_vm3 = vcmask 1043456   ;;  %vm365_vm4 = vcmask 687104  }
  0x19   :  { %460 = vmatprep.mubr.msk.f32.mxu1 %vm106_vm0, %v102_v10  ;;  %610 = vmatpush3.bf16.msra.mxu0 %v609_v2  ;;  %v638_v14 = vpack.c.bf16 %v73_v9, %v72_v8  ;;  %v42_v15 = vld [vmem:[%s1031_s1 + $0x70] sm:$0xff]  ;;  %v615_v16 = vpack.c.bf16 %v59_v12, %v58_v11  ;;  %v43_v17 = vld [vmem:[%s1031_s1 + $0x78] sm:$0xff]  ;;  %v76_v22 = vld [vmem:[%s1031_s1 + $0x180] sm:$0xff]  ;;  %vm443_vm5 = vcmask 74752  }
  0x1a   :  { %636 = vmatpush1.bf16.msra.mxu1 %v635_v3  ;;  %612 = vmatprep.subr.bf16.mxu0 %v611_v6  ;;  %v74_v18 = vld [vmem:[%s1031_s1 + $0x170] sm:$0xff]  ;;  %v75_v19 = vld [vmem:[%s1031_s1 + $0x178] sm:$0xff]  ;;  %v617_v20 = vpack.c.bf16 %v43_v17, %v42_v15  ;;  %v77_v23 = vld [vmem:[%s1031_s1 + $0x188] sm:$0xff]  ;;  %s716_s1 = smov [#allocation2]  }
  0x1b   :  { %637 = vmatprep.subr.bf16.mxu1 %v712_v4  ;;  %v641_v21 = vpack.c.bf16 %v75_v19, %v74_v18  ;;  %v250_v24 = vld [vmem:[%s1033_s3] sm:$0xff]  ;;  %v251_v25 = vld [vmem:[%s1033_s3 + $0x8] sm:$0xff]  ;;  %v644_v26 = vpack.c.bf16 %v77_v23, %v76_v22  ;;  %v252_v28 = vld [vmem:[%s1033_s3 + $0x10] sm:$0xff]  ;;  %s451_s15 = sshll.u32 %s716_s1, 4  ;;  %s452_s15 = int_to_ptr.vmem [resolvable:$true] %s451_s15 }
  0x1c   :  { %v647_v27 = vpack.c.bf16 %v251_v25, %v250_v24  ;;  %v253_v29 = vld [vmem:[%s1033_s3 + $0x18] sm:$0xff]  ;;  %v254_v31 = vld [vmem:[%s1033_s3 + $0x20] sm:$0xff]  ;;  %v255_v32 = vld [vmem:[%s1033_s3 + $0x28] sm:$0xff]  ;;  %p693_p1 = scmp.lt.s32.totalorder %s452_s15, %s452_s15 }
  0x1d   :  { %614 = vmatpush3.bf16.msra.mxu0 %v613_v13  ;;  %v650_v30 = vpack.c.bf16 %v253_v29, %v252_v28  ;;  %v653_v33 = vpack.c.bf16 %v255_v32, %v254_v31  ;;  %v256_v34 = vld [vmem:[%s1033_s3 + $0x30] sm:$0xff]  ;;  %v257_v35 = vld [vmem:[%s1033_s3 + $0x38] sm:$0xff]  ;;  %v258_v37 = vld [vmem:[%s1033_s3 + $0x40] sm:$0xff] }
  0x1e   :  { %639 = vmatpush1.bf16.msra.mxu1 %v638_v14  ;;  %616 = vmatprep.subr.bf16.mxu0 %v615_v16  ;;  %v656_v36 = vpack.c.bf16 %v257_v35, %v256_v34  ;;  %v259_v38 = vld [vmem:[%s1033_s3 + $0x48] sm:$0xff]  ;;  %v260_v40 = vld [vmem:[%s1033_s3 + $0x50] sm:$0xff]  ;;  %v261_v41 = vld [vmem:[%s1033_s3 + $0x58] sm:$0xff] }
  0x1f   :  { %640 = vmatprep.subr.bf16.mxu1 %v712_v4  ;;  %v659_v39 = vpack.c.bf16 %v259_v38, %v258_v37  ;;  %v662_v42 = vpack.c.bf16 %v261_v41, %v260_v40  ;;  %v262_v43 = vld [vmem:[%s1033_s3 + $0x60] sm:$0xff]  ;;  %v263_v44 = vld [vmem:[%s1033_s3 + $0x68] sm:$0xff]  ;;  %v264_v47 = vld [vmem:[%s1033_s3 + $0x70] sm:$0xff] }
  0x20   :  { %v665_v45 = vpack.c.bf16 %v263_v44, %v262_v43  ;;  %v347_v48 = vld [vmem:[%s1035_s5] sm:$0xff]  ;;  %v348_v49 = vld [vmem:[%s1035_s5 + $0x8] sm:$0xff]  ;;  %v349_v50 = vld [vmem:[%s1035_s5 + $0x10] sm:$0xff] }
  0x21   :  { %618 = vmatpush3.bf16.msra.mxu0 %v617_v20  ;;  %v668_v51 = vpack.c.bf16 %v348_v49, %v347_v48  ;;  %v350_v52 = vld [vmem:[%s1035_s5 + $0x18] sm:$0xff]  ;;  %v351_v54 = vld [vmem:[%s1035_s5 + $0x20] sm:$0xff]  ;;  %v352_v55 = vld [vmem:[%s1035_s5 + $0x28] sm:$0xff] }
  0x22   :  { %642 = vmatpush1.bf16.msra.mxu1 %v641_v21  ;;  %646 = vmatprep.subr.bf16.mxu0 %v712_v4  ;;  %v671_v53 = vpack.c.bf16 %v350_v52, %v349_v50  ;;  %v674_v56 = vpack.c.bf16 %v352_v55, %v351_v54  ;;  %v353_v57 = vld [vmem:[%s1035_s5 + $0x30] sm:$0xff]  ;;  %v354_v58 = vld [vmem:[%s1035_s5 + $0x38] sm:$0xff]  ;;  %v459_v62 = vld [vmem:[%s1032_s2] ss:$0 sm:$0xff] }
  0x23   :  { %643 = vmatprep.subr.bf16.mxu1 %v712_v4  ;;  %v677_v59 = vpack.c.bf16 %v354_v58, %v353_v57  ;;  %v355_v6 = vld [vmem:[%s1035_s5 + $0x40] sm:$0xff]  ;;  %v357_v8 = vld [vmem:[%s1035_s5 + $0x50] sm:$0xf] }
  0x24   :  { %174 = vmatmul.mubr.f32.vlgmr.msra.gmra.mrb[0].mxu0 %v93_v61  ;;  %v461_v9 = vld [vmem:[%s1034_s4] ss:$0 sm:$0xff] }
  0x25   :  { %648 = vmatpush3.bf16.msra.mxu0 %v647_v27  ;;  %559 = vmatprep.mubr.msk.f32.mxu0 %vm715_vm1, %v714_v46  ;;  %v463_v14 = vld [vmem:[%s1036_s6] ss:$0 sm:$0xff] }
  0x26   :  { %645 = vmatpush1.bf16.msra.mxu1 %v644_v26  ;;  %649 = vmatprep.subr.bf16.mxu0 %v712_v4 }
  0x27   :  { %667 = vmatprep.subr.bf16.mxu1 %v712_v4 }
  0x29   :  { %244 = vmatmul.mubr.f32.vlgmr.msra.gmra.mrb[0].mxu1 %v100_v1  ;;  %651 = vmatpush3.bf16.msra.mxu0 %v650_v30 }
  0x2a   :  { %652 = vmatprep.subr.bf16.mxu0 %v712_v4  ;;  %584 = vmatprep.mubr.msk.f32.mxu1 %vm715_vm1, %v714_v46 }
  0x2b   :  { %669 = vmatpush3.bf16.msra.mxu1 %v668_v51 }
  0x2c   :  { %670 = vmatprep.subr.bf16.mxu1 %v712_v4 }
  0x2d   :  { %654 = vmatpush3.bf16.msra.mxu0 %v653_v33 }
  0x2e   :  { %655 = vmatprep.subr.bf16.mxu0 %v712_v4 }
  0x2f   :  { %672 = vmatpush3.bf16.msra.mxu1 %v671_v53 }
  0x30   :  { %673 = vmatprep.subr.bf16.mxu1 %v712_v4 }
  0x31   :  { %657 = vmatpush3.bf16.msra.mxu0 %v656_v36 }
  0x32   :  { %658 = vmatprep.subr.bf16.mxu0 %v712_v4 }
  0x33   :  { %675 = vmatpush3.bf16.msra.mxu1 %v674_v56 }
  0x34   :  { %676 = vmatprep.subr.bf16.mxu1 %v712_v4 }
  0x35   :  { %660 = vmatpush3.bf16.msra.mxu0 %v659_v39 }
  0x36   :  { %661 = vmatprep.subr.bf16.mxu0 %v712_v4 }
  0x37   :  { %678 = vmatpush3.bf16.msra.mxu1 %v677_v59 }
  0x38   :  { %679 = vmatprep.subr.bf16.mxu1 %v712_v4 }
  0x39   :  { %663 = vmatpush3.bf16.msra.mxu0 %v662_v42 }
  0x3a   :  { %664 = vmatprep.subr.bf16.mxu0 %v712_v4  ;;  %v356_v4 = vld [vmem:[%s1035_s5 + $0x48] sm:$0xff]  ;;  %s688_s5 = scalar_lea.vmem %s452_s15, 32 }
  0x3b   :  { %v680_v7 = vpack.c.bf16 %v356_v4, %v355_v6  ;;  %p689_p0 = scmp.ne.s32.totalorder %s452_s15, %s688_s5  ;;  %p694_p2 = scmp.lt.s32.totalorder %s688_s5, %s688_s5 }
  0x3d   :  { %666 = vmatpush3.bf16.msra.mxu0 %v665_v45  ;;  %681 = vmatpush3.bf16.msra.mxu1 %v680_v7  ;;  %p695_p3 = por %p694_p2, %p693_p1 }
  0x3e   :  { %557 = vmatprep.subr.mxu0 %v714_v46  ;;  %582 = vmatprep.subr.mxu1 %v714_v46 }
  0x3f   :  { %p696_p4 = pnand %p695_p3, %p689_p0 }
  0x41   :  { %558 = vmatpush3.msra.mxu0 %v264_v47  ;;  %583 = vmatpush3.msk.msra.mxu1 %vm369_vm3, %v357_v8 }
  0xf7   :  { %v498_v60 = vpop.f32.mrb[0].mxu0 }
  0xf8   :  { %v499_v61 = vpop.f32.mrb[1].mxu0 }
  0xf9   :  { %v500_v63 = vadd.f32 %v499_v61, %v498_v60 }
  0xfb   :  { %v176_v0 = vadd.f32 %v500_v63, %v459_v62 }
  0xfc   :  { %v245_v1 = vpop.f32.mrb[0].mxu1 }
  0xfd   :  { %v247_v2 = vpop.f32.mrb[1].mxu1  ;;  %v246_v3 = vadd.f32 %v245_v1, %v176_v0 }
  0xff   :  { %v249_v5 = vmax.f32 %v246_v3, 0.0 }
 0x101   :  { %560 = vmatmul.mubr.msk.f32.vlgmr.msra.gmra.mrb[2].mxu0 %vm272_vm2, %v249_v5 }
 0x1d4   :  { %v342_v10 = vpop.f32.mrb[2].mxu0 }
 0x1d5   :  { %v343_v11 = vadd.f32 %v461_v9, %v342_v10  ;;  %v561_v12 = vpop.f32.mrb[3].mxu0 }
 0x1d7   :  { %v346_v13 = vmax.f32 %v343_v11, 0.0 }
 0x1d9   :  { %585 = vmatmul.mubr.msk.f32.vlgmr.msra.gmra.mrb[2].mxu1 %vm365_vm4, %v346_v13 }
 0x2ac   :  { %v439_v15 = vpop.f32.mrb[2].mxu1 }
 0x2ad   :  { %v440_v16 = vadd.f32 %v463_v14, %v439_v15  ;;  %v586_v17 = vpop.f32.mrb[3].mxu1 }
 0x2af   :  { %444 = vst.msk [vmem:[#allocation2] sm:$0x3] %vm443_vm5, %v440_v16 }
 0x2b0   :  { %699 = shalt.err (!%p696_p4)
}
 0x2b1   :  { %s700_s17 = scalar_lea.hbm %s1037_s7, 32 }
 0x2b2   :  { %p701_p5 = scmp.ne.s32.totalorder %s1037_s7, %s700_s17  ;;  %p704_p6 = scmp.lt.u32.totalorder %s700_s17, %s1037_s7 }
 0x2b4   :  { %p706_p7 = pnand %p704_p6, %p701_p5 }
 0x2b6   :  { %709 = shalt.err (!%p706_p7)
}
 0x2b7   :  { %454 = dma.vmem_to_hbm [thread:$0]  %s452_s15, 32, %s1037_s7, [#allocation3]  }
 0x2b8   :  { %710 = dma.done.wait [#allocation3], 32  }
 0x2b9   :  { %711 = vsyncadd [#allocation3], 4294967264 }
 0x2ba   :  { %458 = vsyncpa [#allocation3], 1 }

</bundles_post_ra>
